<compile_context>
chip_gen: v6e
topology: v6e:2x2x1
jax: 0.10.0
libtpu: 0.0.40
codegen_flags: <defaults>
</compile_context>

<pallas_src>
import numpy as np
import jax
import jax.numpy as jnp
from jax.experimental import pallas as pl
from jax.experimental.pallas import tpu as pltpu


CHUNKS = 64      # (oh, ow_group) feature chunks per image (16 pooled rows * 4 groups)
LANES = 128      # padded window width: 4 rows * 10 cols * 3 cin = 120 -> 128


# ---------------------------------------------------------------------------
# Fused kernel for one batch tile of TB images.
#   x_ref  : (64, TB, 128) bf16  im2col windows; chunk k = oh*4+owg major,
#                                image minor; lane = r*30 + cc*3 + cin (pad->128)
#   wc_ref : (128, 512) bf16     block-structured conv weight,
#                                out lane = p*128 + q*32 + c
#   bc_ref : (1, 128)  f32       conv bias per (q, c) lane (ch 18..31 zero)
#   w1_ref : (64, 128, 64) bf16  fc1 weight chunked to the pooled layout
#   b1_ref : (1, 64)   f32
#   w2_ref : (64, 128) bf16      fc2 weight padded to 128 output lanes
#   b2_ref : (1, 128)  f32
#   o_ref  : (TB, 128) f32       logits (first 10 lanes valid)
#   pooled_ref : (64, TB, 128) bf16 VMEM scratch with pooled activations
# ---------------------------------------------------------------------------
def mini_fused_kernel(x_ref, wc_ref, bc_ref, w1_ref, b1_ref, w2_ref, b2_ref,
                      o_ref, pooled_ref):
    tb = x_ref.shape[1]

    # ---- conv as ONE dense matmul over all 64*TB window rows ----------------
    x2 = x_ref[...].reshape(CHUNKS * tb, LANES)
    y = jnp.dot(x2, wc_ref[...], preferred_element_type=jnp.float32)  # (64*TB, 512)

    # Max over the 4 pool positions (p is the major lane index -> 128-aligned),
    # then bias + ReLU.  Valid because the bias is uniform across pool
    # positions and ReLU is monotone: ReLU(max(y)+b) == max(ReLU(y+b)),
    # matching the PyTorch relu -> pool order.
    m = jnp.maximum(jnp.maximum(y[:, 0:128], y[:, 128:256]),
                    jnp.maximum(y[:, 256:384], y[:, 384:512]))
    a = jnp.maximum(m + bc_ref[...], 0.0).astype(jnp.bfloat16)
    pooled_ref[...] = a.reshape(CHUNKS, tb, LANES)

    # ---- fc1: accumulate over the 64 feature chunks (each K = 128) ----------
    def body(k, acc):
        return acc + jnp.dot(pooled_ref[k], w1_ref[k],
                             preferred_element_type=jnp.float32)
    h = jax.lax.fori_loop(0, CHUNKS, body, jnp.zeros((tb, 64), jnp.float32))
    h = jnp.maximum(h + b1_ref[...], 0.0).astype(jnp.bfloat16)

    # ---- fc2 ----------------------------------------------------------------
    o_ref[...] = (jnp.dot(h, w2_ref[...], preferred_element_type=jnp.float32)
                  + b2_ref[...]).astype(o_ref.dtype)


# ---------------------------------------------------------------------------
# One-time parameter preparation (numpy, hoisted out of the forward pass).
# ---------------------------------------------------------------------------
def prepare_params(params):
    w_conv, b_conv, w1, b1, w2, b2 = [np.asarray(p, np.float32) for p in params]

    # Block-structured conv weight (128, 512):
    #   input lane  = r*30 + cc*3 + cin   (r = ph+kh, cc = 2q+pw+kw)
    #   output lane = p*128 + q*32 + c    (p = ph*2+pw, channels padded 18->32)
    wbig = np.zeros((128, 512), np.float32)
    for q in range(4):
        for ph in range(2):
            for pw in range(2):
                p = ph * 2 + pw
                for kh in range(3):
                    for kw in range(3):
                        li = (ph + kh) * 30 + (2 * q + pw + kw) * 3
                        lo = p * 128 + q * 32
                        wbig[li:li + 3, lo:lo + 18] = w_conv[:, :, kh, kw].T

    bbig = np.tile(np.pad(b_conv, (0, 14)), 4).reshape(1, 128)

    # fc1 weight: bake in the PyTorch (c, h, w) flatten permutation and the
    # kernel's (oh, owg, q, c[0:32]) pooled-feature layout, chunked over k.
    w1r = w1.reshape(64, 18, 16, 4, 4)                # (j, c, oh, owg, q)
    w1t = np.transpose(w1r, (2, 3, 4, 1, 0))          # (oh, owg, q, c, j)
    w1p = np.zeros((16, 4, 4, 32, 64), np.float32)
    w1p[:, :, :, :18, :] = w1t
    w1p = w1p.reshape(CHUNKS, 128, 64)

    # fc2 padded to 128 output lanes for unmasked stores.
    w2p = np.zeros((64, 128), np.float32)
    w2p[:, :10] = w2.T
    b2p = np.zeros((1, 128), np.float32)
    b2p[0, :10] = b2

    return dict(
        wbig=jnp.asarray(wbig, jnp.bfloat16),
        bbig=jnp.asarray(bbig, jnp.float32),
        w1p=jnp.asarray(w1p, jnp.bfloat16),
        b1=jnp.asarray(b1.reshape(1, 64), jnp.float32),
        w2p=jnp.asarray(w2p, jnp.bfloat16),
        b2p=jnp.asarray(b2p, jnp.float32),
    )


# ---------------------------------------------------------------------------
# Forward pass.  x: (B, 3, 32, 32) float32 NCHW (PyTorch convention).
# ---------------------------------------------------------------------------
def mini_forward(x, pp):
    B = x.shape[0]
    assert x.shape[1:] == (3, 32, 32), x.shape
    TB = min(32, ((B + 7) // 8) * 8)       # images per grid step (multiple of 8)
    Bp = ((B + TB - 1) // TB) * TB         # padded batch

    # ---- glue (bf16): windowed im2col with the pool grouping built in -------
    xb = x.astype(jnp.bfloat16)
    if Bp != B:
        xb = jnp.pad(xb, ((0, Bp - B), (0, 0), (0, 0), (0, 0)))
    xt = jnp.transpose(xb, (2, 3, 0, 1))                   # (32, 32, Bp, 3) h,w,b,cin
    xp = jnp.pad(xt, ((1, 1), (1, 1), (0, 0), (0, 0)))     # (34, 34, Bp, 3)
    # 4 input rows per pooled row (stride 2); 10 input cols per 4-pixel group (stride 8)
    rows = jnp.stack([xp[r:r + 31:2] for r in range(4)], axis=3)         # (16,34,Bp,4,3)
    cols = jnp.stack([rows[:, c:c + 25:8] for c in range(10)], axis=4)   # (16,4,Bp,4,10,3)
    win = cols.reshape(CHUNKS, Bp, 120)
    win = jnp.pad(win, ((0, 0), (0, 0), (0, LANES - 120)))               # (64, Bp, 128)
    # TODO(synk): build these windows in-VMEM from a padded NHWC tile to cut the
    # remaining ~16 KiB/image im2col HBM read further.

    # ---- fused conv+pool+ReLU -> fc1 -> ReLU -> fc2, gridded over batch -----
    out = pl.pallas_call(
        mini_fused_kernel,
        out_shape=jax.ShapeDtypeStruct((Bp, 128), jnp.float32),
        grid=(Bp // TB,),
        in_specs=[
            pl.BlockSpec((CHUNKS, TB, LANES), lambda i: (0, i, 0)),
            pl.BlockSpec((128, 512), lambda i: (0, 0)),       # weights resident
            pl.BlockSpec((1, 128), lambda i: (0, 0)),
            pl.BlockSpec((CHUNKS, 128, 64), lambda i: (0, 0, 0)),
            pl.BlockSpec((1, 64), lambda i: (0, 0)),
            pl.BlockSpec((64, 128), lambda i: (0, 0)),
            pl.BlockSpec((1, 128), lambda i: (0, 0)),
        ],
        out_specs=pl.BlockSpec((TB, 128), lambda i: (i, 0)),
        scratch_shapes=[pltpu.VMEM((CHUNKS, TB, LANES), jnp.bfloat16)],
        compiler_params=pltpu.CompilerParams(dimension_semantics=("parallel",)),
    )(win, pp["wbig"], pp["bbig"], pp["w1p"], pp["b1"], pp["w2p"], pp["b2p"])

    return out[:B, :10]


# ---------------------------------------------------------------------------
# Pure-JAX reference (mirrors the PyTorch forward) for a correctness check.
# ---------------------------------------------------------------------------
def reference_forward(x, params):
    w_conv, b_conv, w1, b1, w2, b2 = params
    y = jax.lax.conv_general_dilated(
        x, w_conv, window_strides=(1, 1), padding=((1, 1), (1, 1)),
        dimension_numbers=("NCHW", "OIHW", "NCHW"),
        precision=jax.lax.Precision.HIGHEST,
    ) + b_conv[None, :, None, None]
    y = jnp.maximum(y, 0.0)
    y = jax.lax.reduce_window(y, -jnp.inf, jax.lax.max,
                              (1, 1, 2, 2), (1, 1, 2, 2), "VALID")
    y = y.reshape(y.shape[0], -1)
    h = jnp.maximum(jnp.dot(y, w1.T, precision=jax.lax.Precision.HIGHEST) + b1, 0.0)
    return jnp.dot(h, w2.T, precision=jax.lax.Precision.HIGHEST) + b2


def init_params(key):
    k = jax.random.split(key, 6)
    w_conv = 0.1 * jax.random.normal(k[0], (18, 3, 3, 3), jnp.float32)    # OIHW
    b_conv = 0.1 * jax.random.normal(k[1], (18,), jnp.float32)
    w1 = 0.02 * jax.random.normal(k[2], (64, 18 * 16 * 16), jnp.float32)  # (out, in)
    b1 = 0.02 * jax.random.normal(k[3], (64,), jnp.float32)
    w2 = 0.1 * jax.random.normal(k[4], (10, 64), jnp.float32)
    b2 = 0.1 * jax.random.normal(k[5], (10,), jnp.float32)
    return (w_conv, b_conv, w1, b1, w2, b2)


if __name__ == "__main__":
    key = jax.random.PRNGKey(0)
    kx, kp = jax.random.split(key)
    B = 2
    x = jax.random.normal(kx, (B, 3, 32, 32), jnp.float32)   # NCHW like PyTorch
    params = init_params(kp)
    prepped = prepare_params(params)                          # one-time prep

    forward = jax.jit(mini_forward)
    out = jax.block_until_ready(forward(x, prepped))
    ref = jax.block_until_ready(reference_forward(x, params))

    assert out.shape == (B, 10), out.shape
    max_err = float(jnp.max(jnp.abs(out - ref)))
    assert jnp.allclose(out, ref, rtol=2e-2, atol=2e-2), ("mismatch vs reference", max_err)
    print("KERNEL_OK")
</pallas_src>

<mosaic_0001>
module attributes {stable_mosaic.version = 11 : i64} {
  func.func @mini_fused_kernel(%arg0: i32, %arg1: memref<64x8x128xbf16, #tpu.memory_space<vmem>>, %arg2: memref<128x512xbf16, #tpu.memory_space<vmem>>, %arg3: memref<1x128xf32, #tpu.memory_space<vmem>>, %arg4: memref<64x128x64xbf16, #tpu.memory_space<vmem>>, %arg5: memref<1x64xf32, #tpu.memory_space<vmem>>, %arg6: memref<64x128xbf16, #tpu.memory_space<vmem>>, %arg7: memref<1x128xf32, #tpu.memory_space<vmem>>, %arg8: memref<8x128xf32, #tpu.memory_space<vmem>>, %arg9: memref<64x8x128xbf16, #tpu.memory_space<vmem>>) attributes {dimension_semantics = [#tpu.dimension_semantics<parallel>], iteration_bounds = array<i64: 1>, scalar_prefetch = 0 : i64, scratch_operands = 1 : i64, tpu.core_type = #tpu.core_type<tc>, window_params = [{transform_indices = @transform_0, window_bounds = array<i64: 64, 8, 128>}, {pipeline_mode = #tpu.pipeline_mode<synchronous>, transform_indices = @transform_1, window_bounds = array<i64: 128, 512>}, {pipeline_mode = #tpu.pipeline_mode<synchronous>, transform_indices = @transform_2, window_bounds = array<i64: 1, 128>}, {pipeline_mode = #tpu.pipeline_mode<synchronous>, transform_indices = @transform_3, window_bounds = array<i64: 64, 128, 64>}, {pipeline_mode = #tpu.pipeline_mode<synchronous>, transform_indices = @transform_4, window_bounds = array<i64: 1, 64>}, {pipeline_mode = #tpu.pipeline_mode<synchronous>, transform_indices = @transform_5, window_bounds = array<i64: 64, 128>}, {pipeline_mode = #tpu.pipeline_mode<synchronous>, transform_indices = @transform_6, window_bounds = array<i64: 1, 128>}, {transform_indices = @transform_7, window_bounds = array<i64: 8, 128>}]} {
    %c0 = arith.constant 0 : index
    %c0_0 = arith.constant 0 : index
    %c0_1 = arith.constant 0 : index
    %0 = vector.load %arg1[%c0, %c0_0, %c0_1] : memref<64x8x128xbf16, #tpu.memory_space<vmem>>, vector<64x8x128xbf16>
    %1 = vector.shape_cast %0 : vector<64x8x128xbf16> to vector<512x128xbf16>
    %c0_2 = arith.constant 0 : index
    %c0_3 = arith.constant 0 : index
    %2 = vector.load %arg2[%c0_2, %c0_3] : memref<128x512xbf16, #tpu.memory_space<vmem>>, vector<128x512xbf16>
    %cst = arith.constant dense<0.000000e+00> : vector<512x512xf32>
    %3 = tpu.matmul %1, %2, %cst {dimension_numbers = #tpu.dot_dimension_numbers<[1], [0], [0], [1], [0, 0, 1, 1], [], []>} : vector<512x128xbf16>, vector<128x512xbf16>, vector<512x512xf32> -> vector<512x512xf32>
    %4 = vector.extract_strided_slice %3 {offsets = [0, 0], sizes = [512, 128], strides = [1, 1]} : vector<512x512xf32> to vector<512x128xf32>
    %5 = vector.extract_strided_slice %3 {offsets = [0, 128], sizes = [512, 128], strides = [1, 1]} : vector<512x512xf32> to vector<512x128xf32>
    %6 = arith.maximumf %4, %5 : vector<512x128xf32>
    %7 = vector.extract_strided_slice %3 {offsets = [0, 256], sizes = [512, 128], strides = [1, 1]} : vector<512x512xf32> to vector<512x128xf32>
    %8 = vector.extract_strided_slice %3 {offsets = [0, 384], sizes = [512, 128], strides = [1, 1]} : vector<512x512xf32> to vector<512x128xf32>
    %9 = arith.maximumf %7, %8 : vector<512x128xf32>
    %10 = arith.maximumf %6, %9 : vector<512x128xf32>
    %c0_4 = arith.constant 0 : index
    %c0_5 = arith.constant 0 : index
    %11 = vector.load %arg3[%c0_4, %c0_5] : memref<1x128xf32, #tpu.memory_space<vmem>>, vector<1x128xf32>
    %12 = vector.broadcast %11 : vector<1x128xf32> to vector<512x128xf32>
    %13 = arith.addf %10, %12 : vector<512x128xf32>
    %cst_6 = arith.constant 0.000000e+00 : f32
    %14 = vector.broadcast %cst_6 : f32 to vector<512x128xf32>
    %15 = arith.maximumf %13, %14 : vector<512x128xf32>
    %16 = arith.truncf %15 : vector<512x128xf32> to vector<512x128xbf16>
    %17 = vector.shape_cast %16 : vector<512x128xbf16> to vector<64x8x128xbf16>
    %c0_7 = arith.constant 0 : index
    %c0_8 = arith.constant 0 : index
    %c0_9 = arith.constant 0 : index
    %18 = vector.load %arg9[%c0_7, %c0_8, %c0_9] : memref<64x8x128xbf16, #tpu.memory_space<vmem>>, vector<64x8x128xbf16>
    tpu.vector_store %arg9[%c0_7, %c0_8, %c0_9], %17 {strides = array<i32>} : memref<64x8x128xbf16, #tpu.memory_space<vmem>>, vector<64x8x128xbf16>,
    %cst_10 = arith.constant 0.000000e+00 : f32
    %19 = vector.broadcast %cst_10 : f32 to vector<8x64xf32>
    %c0_i32 = arith.constant 0 : i32
    %c64_i32 = arith.constant 64 : i32
    %20 = arith.addi %c0_i32, %c64_i32 : i32
    %c1_i32 = arith.constant 1 : i32
    %21 = scf.for %arg10 = %c0_i32 to %20 step %c1_i32 iter_args(%arg11 = %19) -> (vector<8x64xf32>)  : i32 {
      %34 = arith.index_cast %arg10 : i32 to index
      %c0_22 = arith.constant 0 : index
      %c0_23 = arith.constant 0 : index
      %35 = vector.load %arg9[%34, %c0_22, %c0_23] : memref<64x8x128xbf16, #tpu.memory_space<vmem>>, vector<1x8x128xbf16>
      %36 = vector.shape_cast %35 : vector<1x8x128xbf16> to vector<8x128xbf16>
      %37 = arith.index_cast %arg10 : i32 to index
      %c0_24 = arith.constant 0 : index
      %c0_25 = arith.constant 0 : index
      %38 = vector.load %arg4[%37, %c0_24, %c0_25] : memref<64x128x64xbf16, #tpu.memory_space<vmem>>, vector<1x128x64xbf16>
      %39 = vector.shape_cast %38 : vector<1x128x64xbf16> to vector<128x64xbf16>
      %cst_26 = arith.constant dense<0.000000e+00> : vector<8x64xf32>
      %40 = tpu.matmul %36, %39, %cst_26 {dimension_numbers = #tpu.dot_dimension_numbers<[1], [0], [0], [1], [0, 0, 1, 1], [], []>} : vector<8x128xbf16>, vector<128x64xbf16>, vector<8x64xf32> -> vector<8x64xf32>
      %41 = arith.addf %arg11, %40 : vector<8x64xf32>
      scf.yield %41 : vector<8x64xf32>
    }
    %c64_i32_11 = arith.constant 64 : i32
    %c0_12 = arith.constant 0 : index
    %c0_13 = arith.constant 0 : index
    %22 = vector.load %arg5[%c0_12, %c0_13] : memref<1x64xf32, #tpu.memory_space<vmem>>, vector<1x64xf32>
    %23 = vector.broadcast %22 : vector<1x64xf32> to vector<8x64xf32>
    %24 = arith.addf %21, %23 : vector<8x64xf32>
    %cst_14 = arith.constant 0.000000e+00 : f32
    %25 = vector.broadcast %cst_14 : f32 to vector<8x64xf32>
    %26 = arith.maximumf %24, %25 : vector<8x64xf32>
    %27 = arith.truncf %26 : vector<8x64xf32> to vector<8x64xbf16>
    %c0_15 = arith.constant 0 : index
    %c0_16 = arith.constant 0 : index
    %28 = vector.load %arg6[%c0_15, %c0_16] : memref<64x128xbf16, #tpu.memory_space<vmem>>, vector<64x128xbf16>
    %cst_17 = arith.constant dense<0.000000e+00> : vector<8x128xf32>
    %29 = tpu.matmul %27, %28, %cst_17 {dimension_numbers = #tpu.dot_dimension_numbers<[1], [0], [0], [1], [0, 0, 1, 1], [], []>} : vector<8x64xbf16>, vector<64x128xbf16>, vector<8x128xf32> -> vector<8x128xf32>
    %c0_18 = arith.constant 0 : index
    %c0_19 = arith.constant 0 : index
    %30 = vector.load %arg7[%c0_18, %c0_19] : memref<1x128xf32, #tpu.memory_space<vmem>>, vector<1x128xf32>
    %31 = vector.broadcast %30 : vector<1x128xf32> to vector<8x128xf32>
    %32 = arith.addf %29, %31 : vector<8x128xf32>
    %c0_20 = arith.constant 0 : index
    %c0_21 = arith.constant 0 : index
    %33 = vector.load %arg8[%c0_20, %c0_21] : memref<8x128xf32, #tpu.memory_space<vmem>>, vector<8x128xf32>
    tpu.vector_store %arg8[%c0_20, %c0_21], %32 {strides = array<i32>} : memref<8x128xf32, #tpu.memory_space<vmem>>, vector<8x128xf32>,
    return
  }
  func.func @transform_0(%arg0: i32) -> (i32, i32, i32) {
    %c0_i32 = arith.constant 0 : i32
    %c0_i32_0 = arith.constant 0 : i32
    %c0_i32_1 = arith.constant 0 : i32
    return %c0_i32, %arg0, %c0_i32_0 : i32, i32, i32
  }
  func.func @transform_1(%arg0: i32) -> (i32, i32) {
    %c0_i32 = arith.constant 0 : i32
    %c0_i32_0 = arith.constant 0 : i32
    %c0_i32_1 = arith.constant 0 : i32
    return %c0_i32, %c0_i32_0 : i32, i32
  }
  func.func @transform_2(%arg0: i32) -> (i32, i32) {
    %c0_i32 = arith.constant 0 : i32
    %c0_i32_0 = arith.constant 0 : i32
    %c0_i32_1 = arith.constant 0 : i32
    return %c0_i32, %c0_i32_0 : i32, i32
  }
  func.func @transform_3(%arg0: i32) -> (i32, i32, i32) {
    %c0_i32 = arith.constant 0 : i32
    %c0_i32_0 = arith.constant 0 : i32
    %c0_i32_1 = arith.constant 0 : i32
    %c0_i32_2 = arith.constant 0 : i32
    return %c0_i32, %c0_i32_0, %c0_i32_1 : i32, i32, i32
  }
  func.func @transform_4(%arg0: i32) -> (i32, i32) {
    %c0_i32 = arith.constant 0 : i32
    %c0_i32_0 = arith.constant 0 : i32
    %c0_i32_1 = arith.constant 0 : i32
    return %c0_i32, %c0_i32_0 : i32, i32
  }
  func.func @transform_5(%arg0: i32) -> (i32, i32) {
    %c0_i32 = arith.constant 0 : i32
    %c0_i32_0 = arith.constant 0 : i32
    %c0_i32_1 = arith.constant 0 : i32
    return %c0_i32, %c0_i32_0 : i32, i32
  }
  func.func @transform_6(%arg0: i32) -> (i32, i32) {
    %c0_i32 = arith.constant 0 : i32
    %c0_i32_0 = arith.constant 0 : i32
    %c0_i32_1 = arith.constant 0 : i32
    return %c0_i32, %c0_i32_0 : i32, i32
  }
  func.func @transform_7(%arg0: i32) -> (i32, i32) {
    %c0_i32 = arith.constant 0 : i32
    %c0_i32_0 = arith.constant 0 : i32
    return %arg0, %c0_i32 : i32, i32
  }
}

</mosaic_0001>

<bundles_post_ra>
// kernel: mini_forward.1
= control target key start
LH: loop header
LB: loop body
LE: loop exit
PB: predicated region body
PF: predicated region fallthrough
CT: control target
= control target key end

     0   :  { %v2635_v1 = vmov 0   ;;  %s3044_s1 = inlined_call_operand.vmem [shape: bf16[128,512], index: 1, kind: input, shape index: {}]   ;;  %s3045_s3 = inlined_call_operand.vmem [shape: bf16[64,128,64], index: 3, kind: input, shape index: {}]   ;;  %s3046_s4 = inlined_call_operand.vmem [shape: f32[1,64], index: 4, kind: input, shape index: {}]   ;;  %s3047_s5 = inlined_call_operand.vmem [shape: bf16[64,128], index: 5, kind: input, shape index: {}]   ;;  %s3048_s6 = inlined_call_operand.vmem [shape: f32[1,128], index: 6, kind: input, shape index: {}]   ;;  %s3049_s7 = inlined_call_operand.vmem [shape: f32[8,128], index: 7, kind: output, shape index: {}]   ;;  %s3050_s0 = inlined_call_operand.vmem [shape: bf16[64,8,128], index: 0, kind: input, shape index: {}]   ;;  %s3051_s2 = inlined_call_operand.vmem [shape: f32[1,128], index: 2, kind: input, shape index: {}]  }
   0x1   :  { %v2526_v0 = vld [vmem:[%s3044_s1 + $0xe4] ss:$16 sps:$4 sm:$0xff]   ;;  %507 = vmatprep.mubr.bf16.mxu0 %v2635_v1  ;;  %860 = vmatprep.mubr.bf16.mxu1 %v2635_v1  ;;  %v2528_v2 = vld [vmem:[%s3044_s1 + $0xec] ss:$16 sps:$4 sm:$0xff]   ;;  %v2530_v3 = vld [vmem:[%s3044_s1 + $0xe0] ss:$16 sps:$4 sm:$0xff]  }
   0x2   :  { %475 = vmatprep.subr.bf16.mxu0 %v2526_v0  ;;  %v2531_v4 = vld [vmem:[%s3044_s1 + $0xe8] ss:$16 sps:$4 sm:$0xff]   ;;  %828 = vmatprep.subr.bf16.mxu1 %v2528_v2  ;;  %v2532_v5 = vld [vmem:[%s3044_s1 + $0xc4] ss:$16 sps:$4 sm:$0xff]   ;;  %v2534_v6 = vld [vmem:[%s3044_s1 + $0xcc] ss:$16 sps:$4 sm:$0xff]  }
   0x3   :  { %476 = vmatpush1.bf16.msra.mxu0 %v2530_v3  ;;  %829 = vmatpush1.bf16.msra.mxu1 %v2531_v4  ;;  %v2536_v7 = vld [vmem:[%s3044_s1 + $0xc0] ss:$16 sps:$4 sm:$0xff]   ;;  %v2537_v8 = vld [vmem:[%s3044_s1 + $0xc8] ss:$16 sps:$4 sm:$0xff]   ;;  %v2538_v9 = vld [vmem:[%s3044_s1 + $0xa4] ss:$16 sps:$4 sm:$0xff]  }
   0x4   :  { %477 = vmatprep.subr.bf16.mxu0 %v2532_v5  ;;  %830 = vmatprep.subr.bf16.mxu1 %v2534_v6  ;;  %v2540_v10 = vld [vmem:[%s3044_s1 + $0xac] ss:$16 sps:$4 sm:$0xff]   ;;  %v2542_v11 = vld [vmem:[%s3044_s1 + $0xa0] ss:$16 sps:$4 sm:$0xff]   ;;  %v2543_v12 = vld [vmem:[%s3044_s1 + $0xa8] ss:$16 sps:$4 sm:$0xff]  }
   0x5   :  { %v2544_v13 = vld [vmem:[%s3044_s1 + $0x84] ss:$16 sps:$4 sm:$0xff]   ;;  %v2546_v14 = vld [vmem:[%s3044_s1 + $0x8c] ss:$16 sps:$4 sm:$0xff]   ;;  %v2548_v15 = vld [vmem:[%s3044_s1 + $0x80] ss:$16 sps:$4 sm:$0xff]  }
   0x6   :  { %v2549_v16 = vld [vmem:[%s3044_s1 + $0x88] ss:$16 sps:$4 sm:$0xff]   ;;  %v2550_v17 = vld [vmem:[%s3044_s1 + $0x64] ss:$16 sps:$4 sm:$0xff]   ;;  %v2552_v18 = vld [vmem:[%s3044_s1 + $0x6c] ss:$16 sps:$4 sm:$0xff]  }
   0x7   :  { %478 = vmatpush1.bf16.msra.mxu0 %v2536_v7  ;;  %831 = vmatpush1.bf16.msra.mxu1 %v2537_v8  ;;  %v2554_v19 = vld [vmem:[%s3044_s1 + $0x60] ss:$16 sps:$4 sm:$0xff]   ;;  %v2555_v20 = vld [vmem:[%s3044_s1 + $0x68] ss:$16 sps:$4 sm:$0xff]   ;;  %v2556_v21 = vld [vmem:[%s3044_s1 + $0x44] ss:$16 sps:$4 sm:$0xff]  }
   0x8   :  { %479 = vmatprep.subr.bf16.mxu0 %v2538_v9  ;;  %832 = vmatprep.subr.bf16.mxu1 %v2540_v10  ;;  %v2558_v22 = vld [vmem:[%s3044_s1 + $0x4c] ss:$16 sps:$4 sm:$0xff]   ;;  %v2560_v23 = vld [vmem:[%s3044_s1 + $0x40] ss:$16 sps:$4 sm:$0xff]   ;;  %v2561_v24 = vld [vmem:[%s3044_s1 + $0x48] ss:$16 sps:$4 sm:$0xff]  }
   0x9   :  { %v2562_v25 = vld [vmem:[%s3044_s1 + $0x24] ss:$16 sps:$4 sm:$0xff]   ;;  %v2564_v26 = vld [vmem:[%s3044_s1 + $0x2c] ss:$16 sps:$4 sm:$0xff]   ;;  %v2566_v27 = vld [vmem:[%s3044_s1 + $0x20] ss:$16 sps:$4 sm:$0xff]  }
   0xa   :  { %v2567_v28 = vld [vmem:[%s3044_s1 + $0x28] ss:$16 sps:$4 sm:$0xff]   ;;  %v2568_v29 = vld [vmem:[%s3044_s1 + $0x4] ss:$16 sps:$4 sm:$0xff]   ;;  %v2570_v30 = vld [vmem:[%s3044_s1 + $0xc] ss:$16 sps:$4 sm:$0xff]  }
   0xb   :  { %480 = vmatpush1.bf16.msra.mxu0 %v2542_v11  ;;  %833 = vmatpush1.bf16.msra.mxu1 %v2543_v12  ;;  %v2572_v31 = vld [vmem:[%s3044_s1] ss:$16 sps:$4 sm:$0xff]   ;;  %v2573_v32 = vld [vmem:[%s3044_s1 + $0x8] ss:$16 sps:$4 sm:$0xff]  }
   0xc   :  { %481 = vmatprep.subr.bf16.mxu0 %v2544_v13  ;;  %834 = vmatprep.subr.bf16.mxu1 %v2546_v14  ;;  %v2574_v33 = vld [vmem:[%s3050_s0] sm:$0xff]   ;;  %v2575_v34 = vld [vmem:[%s3050_s0 + $0x8] sm:$0xff]   ;;  %v2576_v35 = vld [vmem:[%s3050_s0 + $0x10] sm:$0xff]  }
   0xd   :  { %v2577_v36 = vld [vmem:[%s3050_s0 + $0x18] sm:$0xff]   ;;  %v2578_v37 = vld [vmem:[%s3050_s0 + $0x20] sm:$0xff]   ;;  %v2579_v38 = vld [vmem:[%s3050_s0 + $0x28] sm:$0xff]  }
   0xe   :  { %v2580_v39 = vld [vmem:[%s3050_s0 + $0x30] sm:$0xff]   ;;  %v2581_v40 = vld [vmem:[%s3050_s0 + $0x38] sm:$0xff]   ;;  %v2582_v41 = vld [vmem:[%s3050_s0 + $0x40] sm:$0xff]  }
   0xf   :  { %482 = vmatpush1.bf16.msra.mxu0 %v2548_v15  ;;  %835 = vmatpush1.bf16.msra.mxu1 %v2549_v16  ;;  %v2583_v42 = vld [vmem:[%s3050_s0 + $0x48] sm:$0xff]   ;;  %v2584_v43 = vld [vmem:[%s3050_s0 + $0x50] sm:$0xff]   ;;  %v2585_v44 = vld [vmem:[%s3050_s0 + $0x58] sm:$0xff]  }
  0x10   :  { %483 = vmatprep.subr.bf16.mxu0 %v2550_v17  ;;  %836 = vmatprep.subr.bf16.mxu1 %v2552_v18  ;;  %v2586_v45 = vld [vmem:[%s3050_s0 + $0x60] sm:$0xff]   ;;  %v2587_v46 = vld [vmem:[%s3050_s0 + $0x68] sm:$0xff]   ;;  %v2588_v47 = vld [vmem:[%s3050_s0 + $0x70] sm:$0xff]  }
  0x11   :  { %v2589_v48 = vld [vmem:[%s3050_s0 + $0x78] sm:$0xff]   ;;  %v2590_v49 = vld [vmem:[%s3050_s0 + $0x80] sm:$0xff]   ;;  %v2591_v50 = vld [vmem:[%s3050_s0 + $0x88] sm:$0xff]  }
  0x12   :  { %v2592_v51 = vld [vmem:[%s3050_s0 + $0x90] sm:$0xff]   ;;  %v2593_v52 = vld [vmem:[%s3050_s0 + $0x98] sm:$0xff]   ;;  %v2594_v53 = vld [vmem:[%s3050_s0 + $0xa0] sm:$0xff]  }
  0x13   :  { %484 = vmatpush1.bf16.msra.mxu0 %v2554_v19  ;;  %837 = vmatpush1.bf16.msra.mxu1 %v2555_v20  ;;  %v2595_v54 = vld [vmem:[%s3050_s0 + $0xa8] sm:$0xff]   ;;  %v2596_v55 = vld [vmem:[%s3050_s0 + $0xb0] sm:$0xff]   ;;  %v2597_v56 = vld [vmem:[%s3050_s0 + $0xb8] sm:$0xff]  }
  0x14   :  { %485 = vmatprep.subr.bf16.mxu0 %v2556_v21  ;;  %838 = vmatprep.subr.bf16.mxu1 %v2558_v22  ;;  %v2598_v57 = vld [vmem:[%s3050_s0 + $0xc0] sm:$0xff]   ;;  %v2599_v3 = vld [vmem:[%s3050_s0 + $0xc8] sm:$0xff]   ;;  %v2600_v21 = vld [vmem:[%s3050_s0 + $0xd0] sm:$0xff]  }
  0x15   :  { %v2909_v5 = vld [vmem:[%s3051_s2] ss:$0 sm:$0xff] }
  0x17   :  { %486 = vmatpush1.bf16.msra.mxu0 %v2560_v23  ;;  %839 = vmatpush1.bf16.msra.mxu1 %v2561_v24 }
  0x18   :  { %487 = vmatprep.subr.bf16.mxu0 %v2562_v25  ;;  %840 = vmatprep.subr.bf16.mxu1 %v2564_v26 }
  0x1b   :  { %488 = vmatpush1.bf16.msra.mxu0 %v2566_v27  ;;  %841 = vmatpush1.bf16.msra.mxu1 %v2567_v28 }
  0x1c   :  { %489 = vmatprep.subr.bf16.mxu0 %v2568_v29  ;;  %842 = vmatprep.subr.bf16.mxu1 %v2570_v30 }
  0x1f   :  { %490 = vmatpush1.bf16.msra.mxu0 %v2572_v31  ;;  %843 = vmatpush1.bf16.msra.mxu1 %v2573_v32 }
  0x22   :  { %508 = vmatmul.mubr.bf16.vlgmr.msra.gmra.mxu0 %v2574_v33  ;;  %861 = vmatmul.mubr.bf16.vlgmr.msra.gmra.mxu1 %v2574_v33 }
  0x23   :  { %517 = vmatprep.mubr.bf16.mxu0 %v2635_v1  ;;  %870 = vmatprep.mubr.bf16.mxu1 %v2635_v1 }
  0x2a   :  { %518 = vmatmul.mubr.bf16.gmra.mxu0 %v2575_v34  ;;  %871 = vmatmul.mubr.bf16.gmra.mxu1 %v2575_v34 }
  0x2b   :  { %527 = vmatprep.mubr.bf16.mxu0 %v2635_v1  ;;  %880 = vmatprep.mubr.bf16.mxu1 %v2635_v1 }
  0x32   :  { %528 = vmatmul.mubr.bf16.gmra.mxu0 %v2576_v35  ;;  %881 = vmatmul.mubr.bf16.gmra.mxu1 %v2576_v35 }
  0x33   :  { %537 = vmatprep.mubr.bf16.mxu0 %v2635_v1  ;;  %890 = vmatprep.mubr.bf16.mxu1 %v2635_v1 }
  0x3a   :  { %538 = vmatmul.mubr.bf16.gmra.mxu0 %v2577_v36  ;;  %891 = vmatmul.mubr.bf16.gmra.mxu1 %v2577_v36 }
  0x3b   :  { %547 = vmatprep.mubr.bf16.mxu0 %v2635_v1  ;;  %900 = vmatprep.mubr.bf16.mxu1 %v2635_v1 }
  0x42   :  { %548 = vmatmul.mubr.bf16.gmra.mxu0 %v2578_v37  ;;  %901 = vmatmul.mubr.bf16.gmra.mxu1 %v2578_v37 }
  0x43   :  { %557 = vmatprep.mubr.bf16.mxu0 %v2635_v1  ;;  %910 = vmatprep.mubr.bf16.mxu1 %v2635_v1 }
  0x4a   :  { %558 = vmatmul.mubr.bf16.gmra.mxu0 %v2579_v38  ;;  %911 = vmatmul.mubr.bf16.gmra.mxu1 %v2579_v38 }
  0x4b   :  { %567 = vmatprep.mubr.bf16.mxu0 %v2635_v1  ;;  %920 = vmatprep.mubr.bf16.mxu1 %v2635_v1 }
  0x52   :  { %568 = vmatmul.mubr.bf16.gmra.mxu0 %v2580_v39  ;;  %921 = vmatmul.mubr.bf16.gmra.mxu1 %v2580_v39 }
  0x53   :  { %577 = vmatprep.mubr.bf16.mxu0 %v2635_v1  ;;  %930 = vmatprep.mubr.bf16.mxu1 %v2635_v1 }
  0x5a   :  { %578 = vmatmul.mubr.bf16.gmra.mxu0 %v2581_v40  ;;  %931 = vmatmul.mubr.bf16.gmra.mxu1 %v2581_v40 }
  0x5b   :  { %587 = vmatprep.mubr.bf16.mxu0 %v2635_v1  ;;  %940 = vmatprep.mubr.bf16.mxu1 %v2635_v1 }
  0x62   :  { %588 = vmatmul.mubr.bf16.gmra.mxu0 %v2582_v41  ;;  %941 = vmatmul.mubr.bf16.gmra.mxu1 %v2582_v41  ;;  %v2601_v41 = vld [vmem:[%s3050_s0 + $0xd8] sm:$0xff]  }
  0x63   :  { %597 = vmatprep.mubr.bf16.mxu0 %v2635_v1  ;;  %950 = vmatprep.mubr.bf16.mxu1 %v2635_v1 }
  0x6a   :  { %598 = vmatmul.mubr.bf16.gmra.mxu0 %v2583_v42  ;;  %951 = vmatmul.mubr.bf16.gmra.mxu1 %v2583_v42 }
  0x6b   :  { %607 = vmatprep.mubr.bf16.mxu0 %v2635_v1  ;;  %960 = vmatprep.mubr.bf16.mxu1 %v2635_v1 }
  0x72   :  { %608 = vmatmul.mubr.bf16.gmra.mxu0 %v2584_v43  ;;  %961 = vmatmul.mubr.bf16.gmra.mxu1 %v2584_v43 }
  0x73   :  { %617 = vmatprep.mubr.bf16.mxu0 %v2635_v1  ;;  %970 = vmatprep.mubr.bf16.mxu1 %v2635_v1 }
  0x7a   :  { %618 = vmatmul.mubr.bf16.gmra.mxu0 %v2585_v44  ;;  %971 = vmatmul.mubr.bf16.gmra.mxu1 %v2585_v44 }
  0x7b   :  { %627 = vmatprep.mubr.bf16.mxu0 %v2635_v1  ;;  %980 = vmatprep.mubr.bf16.mxu1 %v2635_v1 }
  0x82   :  { %628 = vmatmul.mubr.bf16.gmra.mxu0 %v2586_v45  ;;  %981 = vmatmul.mubr.bf16.gmra.mxu1 %v2586_v45 }
  0x83   :  { %637 = vmatprep.mubr.bf16.mxu0 %v2635_v1  ;;  %990 = vmatprep.mubr.bf16.mxu1 %v2635_v1 }
  0x8a   :  { %638 = vmatmul.mubr.bf16.gmra.mxu0 %v2587_v46  ;;  %991 = vmatmul.mubr.bf16.gmra.mxu1 %v2587_v46 }
  0x8b   :  { %647 = vmatprep.mubr.bf16.mxu0 %v2635_v1  ;;  %1000 = vmatprep.mubr.bf16.mxu1 %v2635_v1 }
  0x92   :  { %648 = vmatmul.mubr.bf16.gmra.mxu0 %v2588_v47  ;;  %1001 = vmatmul.mubr.bf16.gmra.mxu1 %v2588_v47 }
  0x93   :  { %657 = vmatprep.mubr.bf16.mxu0 %v2635_v1  ;;  %1010 = vmatprep.mubr.bf16.mxu1 %v2635_v1 }
  0x9a   :  { %658 = vmatmul.mubr.bf16.gmra.mxu0 %v2589_v48  ;;  %1011 = vmatmul.mubr.bf16.gmra.mxu1 %v2589_v48 }
  0x9b   :  { %667 = vmatprep.mubr.bf16.mxu0 %v2635_v1  ;;  %1020 = vmatprep.mubr.bf16.mxu1 %v2635_v1 }
  0xa2   :  { %668 = vmatmul.mubr.bf16.gmra.mxu0 %v2590_v49  ;;  %1021 = vmatmul.mubr.bf16.gmra.mxu1 %v2590_v49 }
  0xa3   :  { %677 = vmatprep.mubr.bf16.mxu0 %v2635_v1  ;;  %1030 = vmatprep.mubr.bf16.mxu1 %v2635_v1 }
  0xaa   :  { %678 = vmatmul.mubr.bf16.gmra.mxu0 %v2591_v50  ;;  %1031 = vmatmul.mubr.bf16.gmra.mxu1 %v2591_v50 }
  0xab   :  { %687 = vmatprep.mubr.bf16.mxu0 %v2635_v1  ;;  %1040 = vmatprep.mubr.bf16.mxu1 %v2635_v1 }
  0xb2   :  { %688 = vmatmul.mubr.bf16.gmra.mxu0 %v2592_v51  ;;  %1041 = vmatmul.mubr.bf16.gmra.mxu1 %v2592_v51 }
  0xb3   :  { %697 = vmatprep.mubr.bf16.mxu0 %v2635_v1  ;;  %1050 = vmatprep.mubr.bf16.mxu1 %v2635_v1 }
  0xba   :  { %698 = vmatmul.mubr.bf16.gmra.mxu0 %v2593_v52  ;;  %1051 = vmatmul.mubr.bf16.gmra.mxu1 %v2593_v52 }
  0xbb   :  { %707 = vmatprep.mubr.bf16.mxu0 %v2635_v1  ;;  %1060 = vmatprep.mubr.bf16.mxu1 %v2635_v1 }
  0xc2   :  { %708 = vmatmul.mubr.bf16.gmra.mxu0 %v2594_v53  ;;  %1061 = vmatmul.mubr.bf16.gmra.mxu1 %v2594_v53 }
  0xc3   :  { %717 = vmatprep.mubr.bf16.mxu0 %v2635_v1  ;;  %1070 = vmatprep.mubr.bf16.mxu1 %v2635_v1 }
  0xca   :  { %718 = vmatmul.mubr.bf16.gmra.mxu0 %v2595_v54  ;;  %1071 = vmatmul.mubr.bf16.gmra.mxu1 %v2595_v54 }
  0xcb   :  { %727 = vmatprep.mubr.bf16.mxu0 %v2635_v1  ;;  %1080 = vmatprep.mubr.bf16.mxu1 %v2635_v1 }
  0xd2   :  { %728 = vmatmul.mubr.bf16.gmra.mxu0 %v2596_v55  ;;  %1081 = vmatmul.mubr.bf16.gmra.mxu1 %v2596_v55 }
  0xd3   :  { %737 = vmatprep.mubr.bf16.mxu0 %v2635_v1  ;;  %1090 = vmatprep.mubr.bf16.mxu1 %v2635_v1 }
  0xda   :  { %738 = vmatmul.mubr.bf16.gmra.mxu0 %v2597_v56  ;;  %1091 = vmatmul.mubr.bf16.gmra.mxu1 %v2597_v56 }
  0xdb   :  { %747 = vmatprep.mubr.bf16.mxu0 %v2635_v1  ;;  %1100 = vmatprep.mubr.bf16.mxu1 %v2635_v1 }
  0xe2   :  { %v509_v58 = vpop.f32.mrf.mxu0  ;;  %748 = vmatmul.mubr.bf16.gmra.mxu0 %v2598_v57  ;;  %v862_v59 = vpop.f32.mrf.mxu1  ;;  %1101 = vmatmul.mubr.bf16.gmra.mxu1 %v2598_v57 }
  0xe3   :  { %757 = vmatprep.mubr.bf16.mxu0 %v2635_v1  ;;  %1110 = vmatprep.mubr.bf16.mxu1 %v2635_v1 }
  0xe4   :  { %v511_v60 = vpop.f32.mrf.mxu0  ;;  %v864_v61 = vpop.f32.mrf.mxu1 }
  0xe5   :  { %v1181_v62 = vmax.f32 %v509_v58, %v511_v60  ;;  %v1245_v63 = vmax.f32 %v862_v59, %v864_v61  ;;  %v2602_v61 = vld [vmem:[%s3050_s0 + $0xe0] sm:$0xff]  }
  0xe6   :  { %v513_v0 = vpop.f32.mrf.mxu0  ;;  %v866_v2 = vpop.f32.mrf.mxu1 }
  0xe7   :  { %v1309_v4 = vmax.f32 %v1181_v62, %v1245_v63 }
  0xe8   :  { %v515_v6 = vpop.f32.mrf.mxu0  ;;  %v868_v7 = vpop.f32.mrf.mxu1 }
  0xe9   :  { %v1182_v8 = vmax.f32 %v513_v0, %v515_v6  ;;  %v1246_v9 = vmax.f32 %v866_v2, %v868_v7  ;;  %v1380_v12 = vadd.f32 %v2909_v5, %v1309_v4 }
  0xea   :  { %v519_v10 = vpop.f32.mrf.mxu0  ;;  %758 = vmatmul.mubr.bf16.gmra.mxu0 %v2599_v3  ;;  %v872_v11 = vpop.f32.mrf.mxu1  ;;  %1111 = vmatmul.mubr.bf16.gmra.mxu1 %v2599_v3 }
  0xeb   :  { %v1310_v13 = vmax.f32 %v1182_v8, %v1246_v9  ;;  %767 = vmatprep.mubr.bf16.mxu0 %v2635_v1  ;;  %1120 = vmatprep.mubr.bf16.mxu1 %v2635_v1  ;;  %v1444_v22 = vmax.f32 %v1380_v12, 0.0 }
  0xec   :  { %v521_v14 = vpop.f32.mrf.mxu0  ;;  %v874_v15 = vpop.f32.mrf.mxu1 }
  0xed   :  { %v1381_v16 = vadd.f32 %v2909_v5, %v1310_v13  ;;  %v1183_v17 = vmax.f32 %v519_v10, %v521_v14  ;;  %v1247_v18 = vmax.f32 %v872_v11, %v874_v15 }
  0xee   :  { %v523_v19 = vpop.f32.mrf.mxu0  ;;  %v876_v20 = vpop.f32.mrf.mxu1 }
  0xef   :  { %v1445_v23 = vmax.f32 %v1381_v16, 0.0  ;;  %v1311_v24 = vmax.f32 %v1183_v17, %v1247_v18 }
  0xf0   :  { %v525_v25 = vpop.f32.mrf.mxu0  ;;  %v878_v26 = vpop.f32.mrf.mxu1 }
  0xf1   :  { %v2271_v27 = vpack.c.bf16 %v1445_v23, %v1444_v22  ;;  %v1184_v28 = vmax.f32 %v523_v19, %v525_v25  ;;  %v1248_v29 = vmax.f32 %v876_v20, %v878_v26  ;;  %v1382_v32 = vadd.f32 %v2909_v5, %v1311_v24  ;;  %v2603_v19 = vld [vmem:[%s3050_s0 + $0xe8] sm:$0xff]  }
  0xf2   :  { %v529_v30 = vpop.f32.mrf.mxu0  ;;  %768 = vmatmul.mubr.bf16.gmra.mxu0 %v2600_v21  ;;  %v882_v31 = vpop.f32.mrf.mxu1  ;;  %1121 = vmatmul.mubr.bf16.gmra.mxu1 %v2600_v21 }
  0xf3   :  { %2272 = vst [vmem:[#allocation2] sm:$0xff] %v2271_v27   ;;  %v1312_v33 = vmax.f32 %v1184_v28, %v1248_v29  ;;  %777 = vmatprep.mubr.bf16.mxu0 %v2635_v1  ;;  %1130 = vmatprep.mubr.bf16.mxu1 %v2635_v1  ;;  %v1446_v42 = vmax.f32 %v1382_v32, 0.0 }
  0xf4   :  { %v531_v34 = vpop.f32.mrf.mxu0  ;;  %v884_v35 = vpop.f32.mrf.mxu1 }
  0xf5   :  { %v1383_v36 = vadd.f32 %v2909_v5, %v1312_v33  ;;  %v1185_v37 = vmax.f32 %v529_v30, %v531_v34  ;;  %v1249_v38 = vmax.f32 %v882_v31, %v884_v35 }
  0xf6   :  { %v533_v39 = vpop.f32.mrf.mxu0  ;;  %v886_v40 = vpop.f32.mrf.mxu1 }
  0xf7   :  { %v1447_v43 = vmax.f32 %v1383_v36, 0.0  ;;  %v1313_v44 = vmax.f32 %v1185_v37, %v1249_v38 }
  0xf8   :  { %v535_v45 = vpop.f32.mrf.mxu0  ;;  %v888_v46 = vpop.f32.mrf.mxu1 }
  0xf9   :  { %v2276_v47 = vpack.c.bf16 %v1447_v43, %v1446_v42  ;;  %v1186_v48 = vmax.f32 %v533_v39, %v535_v45  ;;  %v1250_v49 = vmax.f32 %v886_v40, %v888_v46  ;;  %v1384_v52 = vadd.f32 %v2909_v5, %v1313_v44  ;;  %v2604_v39 = vld [vmem:[%s3050_s0 + $0xf0] sm:$0xff]  }
  0xfa   :  { %v539_v50 = vpop.f32.mrf.mxu0  ;;  %778 = vmatmul.mubr.bf16.gmra.mxu0 %v2601_v41  ;;  %v892_v51 = vpop.f32.mrf.mxu1  ;;  %1131 = vmatmul.mubr.bf16.gmra.mxu1 %v2601_v41 }
  0xfb   :  { %2428 = vst [vmem:[#allocation2 + $0x8] sm:$0xff] %v2276_v47   ;;  %v1314_v53 = vmax.f32 %v1186_v48, %v1250_v49  ;;  %787 = vmatprep.mubr.bf16.mxu0 %v2635_v1  ;;  %1140 = vmatprep.mubr.bf16.mxu1 %v2635_v1  ;;  %v1448_v62 = vmax.f32 %v1384_v52, 0.0 }
  0xfc   :  { %v541_v54 = vpop.f32.mrf.mxu0  ;;  %v894_v55 = vpop.f32.mrf.mxu1 }
  0xfd   :  { %v1385_v56 = vadd.f32 %v2909_v5, %v1314_v53  ;;  %v1187_v57 = vmax.f32 %v539_v50, %v541_v54  ;;  %v1251_v58 = vmax.f32 %v892_v51, %v894_v55 }
  0xfe   :  { %v543_v59 = vpop.f32.mrf.mxu0  ;;  %v896_v60 = vpop.f32.mrf.mxu1 }
  0xff   :  { %v1449_v63 = vmax.f32 %v1385_v56, 0.0  ;;  %v1315_v0 = vmax.f32 %v1187_v57, %v1251_v58 }
 0x100   :  { %v545_v2 = vpop.f32.mrf.mxu0  ;;  %v898_v3 = vpop.f32.mrf.mxu1 }
 0x101   :  { %v2281_v4 = vpack.c.bf16 %v1449_v63, %v1448_v62  ;;  %v1188_v6 = vmax.f32 %v543_v59, %v545_v2  ;;  %v1252_v7 = vmax.f32 %v896_v60, %v898_v3  ;;  %v1386_v10 = vadd.f32 %v2909_v5, %v1315_v0  ;;  %v2605_v59 = vld [vmem:[%s3050_s0 + $0xf8] sm:$0xff]  }
 0x102   :  { %v549_v8 = vpop.f32.mrf.mxu0  ;;  %788 = vmatmul.mubr.bf16.gmra.mxu0 %v2602_v61  ;;  %v902_v9 = vpop.f32.mrf.mxu1  ;;  %1141 = vmatmul.mubr.bf16.gmra.mxu1 %v2602_v61 }
 0x103   :  { %2429 = vst [vmem:[#allocation2 + $0x10] sm:$0xff] %v2281_v4   ;;  %v1316_v11 = vmax.f32 %v1188_v6, %v1252_v7  ;;  %797 = vmatprep.mubr.bf16.mxu0 %v2635_v1  ;;  %1150 = vmatprep.mubr.bf16.mxu1 %v2635_v1  ;;  %v1450_v20 = vmax.f32 %v1386_v10, 0.0 }
 0x104   :  { %v551_v12 = vpop.f32.mrf.mxu0  ;;  %v904_v13 = vpop.f32.mrf.mxu1 }
 0x105   :  { %v1387_v14 = vadd.f32 %v2909_v5, %v1316_v11  ;;  %v1189_v15 = vmax.f32 %v549_v8, %v551_v12  ;;  %v1253_v16 = vmax.f32 %v902_v9, %v904_v13 }
 0x106   :  { %v553_v17 = vpop.f32.mrf.mxu0  ;;  %v906_v18 = vpop.f32.mrf.mxu1 }
 0x107   :  { %v1451_v21 = vmax.f32 %v1387_v14, 0.0  ;;  %v1317_v22 = vmax.f32 %v1189_v15, %v1253_v16 }
 0x108   :  { %v555_v23 = vpop.f32.mrf.mxu0  ;;  %v908_v24 = vpop.f32.mrf.mxu1 }
 0x109   :  { %v2286_v25 = vpack.c.bf16 %v1451_v21, %v1450_v20  ;;  %v1190_v26 = vmax.f32 %v553_v17, %v555_v23  ;;  %v1254_v27 = vmax.f32 %v906_v18, %v908_v24  ;;  %v1388_v30 = vadd.f32 %v2909_v5, %v1317_v22 }
 0x10a   :  { %v559_v28 = vpop.f32.mrf.mxu0  ;;  %798 = vmatmul.mubr.bf16.gmra.mxu0 %v2603_v19  ;;  %v912_v29 = vpop.f32.mrf.mxu1  ;;  %1151 = vmatmul.mubr.bf16.gmra.mxu1 %v2603_v19 }
 0x10b   :  { %2430 = vst [vmem:[#allocation2 + $0x18] sm:$0xff] %v2286_v25   ;;  %v1318_v31 = vmax.f32 %v1190_v26, %v1254_v27  ;;  %807 = vmatprep.mubr.bf16.mxu0 %v2635_v1  ;;  %1160 = vmatprep.mubr.bf16.mxu1 %v2635_v1  ;;  %v1452_v40 = vmax.f32 %v1388_v30, 0.0 }
 0x10c   :  { %v561_v32 = vpop.f32.mrf.mxu0  ;;  %v914_v33 = vpop.f32.mrf.mxu1 }
 0x10d   :  { %v1389_v34 = vadd.f32 %v2909_v5, %v1318_v31  ;;  %v1191_v35 = vmax.f32 %v559_v28, %v561_v32  ;;  %v1255_v36 = vmax.f32 %v912_v29, %v914_v33 }
 0x10e   :  { %v563_v37 = vpop.f32.mrf.mxu0  ;;  %v916_v38 = vpop.f32.mrf.mxu1 }
 0x10f   :  { %v1453_v41 = vmax.f32 %v1389_v34, 0.0  ;;  %v1319_v42 = vmax.f32 %v1191_v35, %v1255_v36 }
 0x110   :  { %v565_v43 = vpop.f32.mrf.mxu0  ;;  %v918_v44 = vpop.f32.mrf.mxu1 }
 0x111   :  { %v2291_v45 = vpack.c.bf16 %v1453_v41, %v1452_v40  ;;  %v1192_v46 = vmax.f32 %v563_v37, %v565_v43  ;;  %v1256_v47 = vmax.f32 %v916_v38, %v918_v44  ;;  %v1390_v50 = vadd.f32 %v2909_v5, %v1319_v42 }
 0x112   :  { %v569_v48 = vpop.f32.mrf.mxu0  ;;  %808 = vmatmul.mubr.bf16.gmra.mxu0 %v2604_v39  ;;  %v922_v49 = vpop.f32.mrf.mxu1  ;;  %1161 = vmatmul.mubr.bf16.gmra.mxu1 %v2604_v39 }
 0x113   :  { %2431 = vst [vmem:[#allocation2 + $0x20] sm:$0xff] %v2291_v45   ;;  %v1320_v51 = vmax.f32 %v1192_v46, %v1256_v47  ;;  %817 = vmatprep.mubr.bf16.mxu0 %v2635_v1  ;;  %1170 = vmatprep.mubr.bf16.mxu1 %v2635_v1  ;;  %v1454_v60 = vmax.f32 %v1390_v50, 0.0 }
 0x114   :  { %v571_v52 = vpop.f32.mrf.mxu0  ;;  %v924_v53 = vpop.f32.mrf.mxu1 }
 0x115   :  { %v1391_v54 = vadd.f32 %v2909_v5, %v1320_v51  ;;  %v1193_v55 = vmax.f32 %v569_v48, %v571_v52  ;;  %v1257_v56 = vmax.f32 %v922_v49, %v924_v53 }
 0x116   :  { %v573_v57 = vpop.f32.mrf.mxu0  ;;  %v926_v58 = vpop.f32.mrf.mxu1 }
 0x117   :  { %v1455_v61 = vmax.f32 %v1391_v54, 0.0  ;;  %v1321_v62 = vmax.f32 %v1193_v55, %v1257_v56 }
 0x118   :  { %v575_v63 = vpop.f32.mrf.mxu0  ;;  %v928_v0 = vpop.f32.mrf.mxu1 }
 0x119   :  { %v2296_v2 = vpack.c.bf16 %v1455_v61, %v1454_v60  ;;  %v1194_v3 = vmax.f32 %v573_v57, %v575_v63  ;;  %v1258_v1 = vmax.f32 %v926_v58, %v928_v0  ;;  %v1392_v7 = vadd.f32 %v2909_v5, %v1321_v62 }
 0x11a   :  { %v579_v4 = vpop.f32.mrf.mxu0  ;;  %818 = vmatmul.mubr.bf16.gmra.mxu0 %v2605_v59  ;;  %v932_v6 = vpop.f32.mrf.mxu1  ;;  %1171 = vmatmul.mubr.bf16.gmra.mxu1 %v2605_v59 }
 0x11b   :  { %2432 = vst [vmem:[#allocation2 + $0x28] sm:$0xff] %v2296_v2   ;;  %v1322_v8 = vmax.f32 %v1194_v3, %v1258_v1  ;;  %v1456_v16 = vmax.f32 %v1392_v7, 0.0 }
 0x11c   :  { %v581_v9 = vpop.f32.mrf.mxu0  ;;  %v934_v10 = vpop.f32.mrf.mxu1 }
 0x11d   :  { %v1393_v11 = vadd.f32 %v2909_v5, %v1322_v8  ;;  %v1195_v12 = vmax.f32 %v579_v4, %v581_v9  ;;  %v1259_v13 = vmax.f32 %v932_v6, %v934_v10 }
 0x11e   :  { %v583_v14 = vpop.f32.mrf.mxu0  ;;  %v936_v15 = vpop.f32.mrf.mxu1 }
 0x11f   :  { %v1457_v17 = vmax.f32 %v1393_v11, 0.0  ;;  %v1323_v18 = vmax.f32 %v1195_v12, %v1259_v13 }
 0x120   :  { %v585_v19 = vpop.f32.mrf.mxu0  ;;  %v938_v20 = vpop.f32.mrf.mxu1 }
 0x121   :  { %v2301_v21 = vpack.c.bf16 %v1457_v17, %v1456_v16  ;;  %v1196_v22 = vmax.f32 %v583_v14, %v585_v19  ;;  %v1260_v23 = vmax.f32 %v936_v15, %v938_v20  ;;  %v1394_v26 = vadd.f32 %v2909_v5, %v1323_v18 }
 0x122   :  { %v589_v24 = vpop.f32.mrf.mxu0  ;;  %v942_v25 = vpop.f32.mrf.mxu1 }
 0x123   :  { %2433 = vst [vmem:[#allocation2 + $0x30] sm:$0xff] %v2301_v21   ;;  %v1324_v27 = vmax.f32 %v1196_v22, %v1260_v23  ;;  %v1458_v35 = vmax.f32 %v1394_v26, 0.0 }
 0x124   :  { %v591_v28 = vpop.f32.mrf.mxu0  ;;  %v944_v29 = vpop.f32.mrf.mxu1 }
 0x125   :  { %v1395_v30 = vadd.f32 %v2909_v5, %v1324_v27  ;;  %v1197_v31 = vmax.f32 %v589_v24, %v591_v28  ;;  %v1261_v32 = vmax.f32 %v942_v25, %v944_v29 }
 0x126   :  { %v593_v33 = vpop.f32.mrf.mxu0  ;;  %v946_v34 = vpop.f32.mrf.mxu1 }
 0x127   :  { %v1459_v36 = vmax.f32 %v1395_v30, 0.0  ;;  %v1325_v37 = vmax.f32 %v1197_v31, %v1261_v32 }
 0x128   :  { %v595_v38 = vpop.f32.mrf.mxu0  ;;  %v948_v39 = vpop.f32.mrf.mxu1 }
 0x129   :  { %v2306_v40 = vpack.c.bf16 %v1459_v36, %v1458_v35  ;;  %v1198_v41 = vmax.f32 %v593_v33, %v595_v38  ;;  %v1262_v42 = vmax.f32 %v946_v34, %v948_v39  ;;  %v1396_v45 = vadd.f32 %v2909_v5, %v1325_v37 }
 0x12a   :  { %v599_v43 = vpop.f32.mrf.mxu0  ;;  %v952_v44 = vpop.f32.mrf.mxu1 }
 0x12b   :  { %2434 = vst [vmem:[#allocation2 + $0x38] sm:$0xff] %v2306_v40   ;;  %v1326_v46 = vmax.f32 %v1198_v41, %v1262_v42  ;;  %v1460_v54 = vmax.f32 %v1396_v45, 0.0 }
 0x12c   :  { %v601_v47 = vpop.f32.mrf.mxu0  ;;  %v954_v48 = vpop.f32.mrf.mxu1 }
 0x12d   :  { %v1397_v49 = vadd.f32 %v2909_v5, %v1326_v46  ;;  %v1199_v50 = vmax.f32 %v599_v43, %v601_v47  ;;  %v1263_v51 = vmax.f32 %v952_v44, %v954_v48 }
 0x12e   :  { %v603_v52 = vpop.f32.mrf.mxu0  ;;  %v956_v53 = vpop.f32.mrf.mxu1 }
 0x12f   :  { %v1461_v55 = vmax.f32 %v1397_v49, 0.0  ;;  %v1327_v56 = vmax.f32 %v1199_v50, %v1263_v51 }
 0x130   :  { %v605_v57 = vpop.f32.mrf.mxu0  ;;  %v958_v58 = vpop.f32.mrf.mxu1 }
 0x131   :  { %v2311_v59 = vpack.c.bf16 %v1461_v55, %v1460_v54  ;;  %v1200_v60 = vmax.f32 %v603_v52, %v605_v57  ;;  %v1264_v61 = vmax.f32 %v956_v53, %v958_v58  ;;  %v1398_v0 = vadd.f32 %v2909_v5, %v1327_v56 }
 0x132   :  { %v609_v62 = vpop.f32.mrf.mxu0  ;;  %v962_v63 = vpop.f32.mrf.mxu1 }
 0x133   :  { %2435 = vst [vmem:[#allocation2 + $0x40] sm:$0xff] %v2311_v59   ;;  %v1328_v2 = vmax.f32 %v1200_v60, %v1264_v61  ;;  %v1462_v10 = vmax.f32 %v1398_v0, 0.0 }
 0x134   :  { %v611_v3 = vpop.f32.mrf.mxu0  ;;  %v964_v1 = vpop.f32.mrf.mxu1 }
 0x135   :  { %v1399_v4 = vadd.f32 %v2909_v5, %v1328_v2  ;;  %v1201_v6 = vmax.f32 %v609_v62, %v611_v3  ;;  %v1265_v7 = vmax.f32 %v962_v63, %v964_v1 }
 0x136   :  { %v613_v8 = vpop.f32.mrf.mxu0  ;;  %v966_v9 = vpop.f32.mrf.mxu1 }
 0x137   :  { %v1463_v11 = vmax.f32 %v1399_v4, 0.0  ;;  %v1329_v12 = vmax.f32 %v1201_v6, %v1265_v7 }
 0x138   :  { %v615_v13 = vpop.f32.mrf.mxu0  ;;  %v968_v14 = vpop.f32.mrf.mxu1 }
 0x139   :  { %v2316_v15 = vpack.c.bf16 %v1463_v11, %v1462_v10  ;;  %v1202_v16 = vmax.f32 %v613_v8, %v615_v13  ;;  %v1266_v17 = vmax.f32 %v966_v9, %v968_v14  ;;  %v1400_v20 = vadd.f32 %v2909_v5, %v1329_v12 }
 0x13a   :  { %v619_v18 = vpop.f32.mrf.mxu0  ;;  %v972_v19 = vpop.f32.mrf.mxu1 }
 0x13b   :  { %2436 = vst [vmem:[#allocation2 + $0x48] sm:$0xff] %v2316_v15   ;;  %v1330_v21 = vmax.f32 %v1202_v16, %v1266_v17  ;;  %v1464_v29 = vmax.f32 %v1400_v20, 0.0 }
 0x13c   :  { %v621_v22 = vpop.f32.mrf.mxu0  ;;  %v974_v23 = vpop.f32.mrf.mxu1 }
 0x13d   :  { %v1401_v24 = vadd.f32 %v2909_v5, %v1330_v21  ;;  %v1203_v25 = vmax.f32 %v619_v18, %v621_v22  ;;  %v1267_v26 = vmax.f32 %v972_v19, %v974_v23 }
 0x13e   :  { %v623_v27 = vpop.f32.mrf.mxu0  ;;  %v976_v28 = vpop.f32.mrf.mxu1 }
 0x13f   :  { %v1465_v30 = vmax.f32 %v1401_v24, 0.0  ;;  %v1331_v31 = vmax.f32 %v1203_v25, %v1267_v26 }
 0x140   :  { %v625_v32 = vpop.f32.mrf.mxu0  ;;  %v978_v33 = vpop.f32.mrf.mxu1 }
 0x141   :  { %v2321_v34 = vpack.c.bf16 %v1465_v30, %v1464_v29  ;;  %v1204_v35 = vmax.f32 %v623_v27, %v625_v32  ;;  %v1268_v36 = vmax.f32 %v976_v28, %v978_v33  ;;  %v1402_v39 = vadd.f32 %v2909_v5, %v1331_v31 }
 0x142   :  { %v629_v37 = vpop.f32.mrf.mxu0  ;;  %v982_v38 = vpop.f32.mrf.mxu1 }
 0x143   :  { %2437 = vst [vmem:[#allocation2 + $0x50] sm:$0xff] %v2321_v34   ;;  %v1332_v40 = vmax.f32 %v1204_v35, %v1268_v36  ;;  %v1466_v48 = vmax.f32 %v1402_v39, 0.0 }
 0x144   :  { %v631_v41 = vpop.f32.mrf.mxu0  ;;  %v984_v42 = vpop.f32.mrf.mxu1 }
 0x145   :  { %v1403_v43 = vadd.f32 %v2909_v5, %v1332_v40  ;;  %v1205_v44 = vmax.f32 %v629_v37, %v631_v41  ;;  %v1269_v45 = vmax.f32 %v982_v38, %v984_v42 }
 0x146   :  { %v633_v46 = vpop.f32.mrf.mxu0  ;;  %v986_v47 = vpop.f32.mrf.mxu1 }
 0x147   :  { %v1467_v49 = vmax.f32 %v1403_v43, 0.0  ;;  %v1333_v50 = vmax.f32 %v1205_v44, %v1269_v45 }
 0x148   :  { %v635_v51 = vpop.f32.mrf.mxu0  ;;  %v988_v52 = vpop.f32.mrf.mxu1 }
 0x149   :  { %v2326_v53 = vpack.c.bf16 %v1467_v49, %v1466_v48  ;;  %v1206_v54 = vmax.f32 %v633_v46, %v635_v51  ;;  %v1270_v55 = vmax.f32 %v986_v47, %v988_v52  ;;  %v1404_v58 = vadd.f32 %v2909_v5, %v1333_v50 }
 0x14a   :  { %v639_v56 = vpop.f32.mrf.mxu0  ;;  %v992_v57 = vpop.f32.mrf.mxu1 }
 0x14b   :  { %2438 = vst [vmem:[#allocation2 + $0x58] sm:$0xff] %v2326_v53   ;;  %v1334_v59 = vmax.f32 %v1206_v54, %v1270_v55  ;;  %v1468_v1 = vmax.f32 %v1404_v58, 0.0 }
 0x14c   :  { %v641_v60 = vpop.f32.mrf.mxu0  ;;  %v994_v61 = vpop.f32.mrf.mxu1 }
 0x14d   :  { %v1405_v62 = vadd.f32 %v2909_v5, %v1334_v59  ;;  %v1207_v63 = vmax.f32 %v639_v56, %v641_v60  ;;  %v1271_v0 = vmax.f32 %v992_v57, %v994_v61 }
 0x14e   :  { %v643_v2 = vpop.f32.mrf.mxu0  ;;  %v996_v3 = vpop.f32.mrf.mxu1 }
 0x14f   :  { %v1469_v4 = vmax.f32 %v1405_v62, 0.0  ;;  %v1335_v6 = vmax.f32 %v1207_v63, %v1271_v0 }
 0x150   :  { %v645_v7 = vpop.f32.mrf.mxu0  ;;  %v998_v8 = vpop.f32.mrf.mxu1 }
 0x151   :  { %v2331_v9 = vpack.c.bf16 %v1469_v4, %v1468_v1  ;;  %v1208_v10 = vmax.f32 %v643_v2, %v645_v7  ;;  %v1272_v11 = vmax.f32 %v996_v3, %v998_v8  ;;  %v1406_v14 = vadd.f32 %v2909_v5, %v1335_v6 }
 0x152   :  { %v649_v12 = vpop.f32.mrf.mxu0  ;;  %v1002_v13 = vpop.f32.mrf.mxu1 }
 0x153   :  { %2439 = vst [vmem:[#allocation2 + $0x60] sm:$0xff] %v2331_v9   ;;  %v1336_v15 = vmax.f32 %v1208_v10, %v1272_v11  ;;  %v1470_v23 = vmax.f32 %v1406_v14, 0.0 }
 0x154   :  { %v651_v16 = vpop.f32.mrf.mxu0  ;;  %v1004_v17 = vpop.f32.mrf.mxu1 }
 0x155   :  { %v1407_v18 = vadd.f32 %v2909_v5, %v1336_v15  ;;  %v1209_v19 = vmax.f32 %v649_v12, %v651_v16  ;;  %v1273_v20 = vmax.f32 %v1002_v13, %v1004_v17 }
 0x156   :  { %v653_v21 = vpop.f32.mrf.mxu0  ;;  %v1006_v22 = vpop.f32.mrf.mxu1 }
 0x157   :  { %v1471_v24 = vmax.f32 %v1407_v18, 0.0  ;;  %v1337_v25 = vmax.f32 %v1209_v19, %v1273_v20 }
 0x158   :  { %v655_v26 = vpop.f32.mrf.mxu0  ;;  %v1008_v27 = vpop.f32.mrf.mxu1 }
 0x159   :  { %v2336_v28 = vpack.c.bf16 %v1471_v24, %v1470_v23  ;;  %v1210_v29 = vmax.f32 %v653_v21, %v655_v26  ;;  %v1274_v30 = vmax.f32 %v1006_v22, %v1008_v27  ;;  %v1408_v33 = vadd.f32 %v2909_v5, %v1337_v25 }
 0x15a   :  { %v659_v31 = vpop.f32.mrf.mxu0  ;;  %v1012_v32 = vpop.f32.mrf.mxu1 }
 0x15b   :  { %2440 = vst [vmem:[#allocation2 + $0x68] sm:$0xff] %v2336_v28   ;;  %v1338_v34 = vmax.f32 %v1210_v29, %v1274_v30  ;;  %v1472_v42 = vmax.f32 %v1408_v33, 0.0 }
 0x15c   :  { %v661_v35 = vpop.f32.mrf.mxu0  ;;  %v1014_v36 = vpop.f32.mrf.mxu1 }
 0x15d   :  { %v1409_v37 = vadd.f32 %v2909_v5, %v1338_v34  ;;  %v1211_v38 = vmax.f32 %v659_v31, %v661_v35  ;;  %v1275_v39 = vmax.f32 %v1012_v32, %v1014_v36 }
 0x15e   :  { %v663_v40 = vpop.f32.mrf.mxu0  ;;  %v1016_v41 = vpop.f32.mrf.mxu1 }
 0x15f   :  { %v1473_v43 = vmax.f32 %v1409_v37, 0.0  ;;  %v1339_v44 = vmax.f32 %v1211_v38, %v1275_v39 }
 0x160   :  { %v665_v45 = vpop.f32.mrf.mxu0  ;;  %v1018_v46 = vpop.f32.mrf.mxu1 }
 0x161   :  { %v2341_v47 = vpack.c.bf16 %v1473_v43, %v1472_v42  ;;  %v1212_v48 = vmax.f32 %v663_v40, %v665_v45  ;;  %v1276_v49 = vmax.f32 %v1016_v41, %v1018_v46  ;;  %v1410_v52 = vadd.f32 %v2909_v5, %v1339_v44 }
 0x162   :  { %v669_v50 = vpop.f32.mrf.mxu0  ;;  %v1022_v51 = vpop.f32.mrf.mxu1 }
 0x163   :  { %2441 = vst [vmem:[#allocation2 + $0x70] sm:$0xff] %v2341_v47   ;;  %v1340_v53 = vmax.f32 %v1212_v48, %v1276_v49  ;;  %v1474_v61 = vmax.f32 %v1410_v52, 0.0 }
 0x164   :  { %v671_v54 = vpop.f32.mrf.mxu0  ;;  %v1024_v55 = vpop.f32.mrf.mxu1 }
 0x165   :  { %v1411_v56 = vadd.f32 %v2909_v5, %v1340_v53  ;;  %v1213_v57 = vmax.f32 %v669_v50, %v671_v54  ;;  %v1277_v58 = vmax.f32 %v1022_v51, %v1024_v55 }
 0x166   :  { %v673_v59 = vpop.f32.mrf.mxu0  ;;  %v1026_v60 = vpop.f32.mrf.mxu1 }
 0x167   :  { %v1475_v62 = vmax.f32 %v1411_v56, 0.0  ;;  %v1341_v63 = vmax.f32 %v1213_v57, %v1277_v58 }
 0x168   :  { %v675_v0 = vpop.f32.mrf.mxu0  ;;  %v1028_v2 = vpop.f32.mrf.mxu1 }
 0x169   :  { %v2346_v3 = vpack.c.bf16 %v1475_v62, %v1474_v61  ;;  %v1214_v1 = vmax.f32 %v673_v59, %v675_v0  ;;  %v1278_v4 = vmax.f32 %v1026_v60, %v1028_v2  ;;  %v1412_v8 = vadd.f32 %v2909_v5, %v1341_v63 }
 0x16a   :  { %v679_v6 = vpop.f32.mrf.mxu0  ;;  %v1032_v7 = vpop.f32.mrf.mxu1 }
 0x16b   :  { %2442 = vst [vmem:[#allocation2 + $0x78] sm:$0xff] %v2346_v3   ;;  %v1342_v9 = vmax.f32 %v1214_v1, %v1278_v4  ;;  %v1476_v17 = vmax.f32 %v1412_v8, 0.0 }
 0x16c   :  { %v681_v10 = vpop.f32.mrf.mxu0  ;;  %v1034_v11 = vpop.f32.mrf.mxu1 }
 0x16d   :  { %v1413_v12 = vadd.f32 %v2909_v5, %v1342_v9  ;;  %v1215_v13 = vmax.f32 %v679_v6, %v681_v10  ;;  %v1279_v14 = vmax.f32 %v1032_v7, %v1034_v11 }
 0x16e   :  { %v683_v15 = vpop.f32.mrf.mxu0  ;;  %v1036_v16 = vpop.f32.mrf.mxu1 }
 0x16f   :  { %v1477_v18 = vmax.f32 %v1413_v12, 0.0  ;;  %v1343_v19 = vmax.f32 %v1215_v13, %v1279_v14 }
 0x170   :  { %v685_v20 = vpop.f32.mrf.mxu0  ;;  %v1038_v21 = vpop.f32.mrf.mxu1 }
 0x171   :  { %v2351_v22 = vpack.c.bf16 %v1477_v18, %v1476_v17  ;;  %v1216_v23 = vmax.f32 %v683_v15, %v685_v20  ;;  %v1280_v24 = vmax.f32 %v1036_v16, %v1038_v21  ;;  %v1414_v27 = vadd.f32 %v2909_v5, %v1343_v19 }
 0x172   :  { %v689_v25 = vpop.f32.mrf.mxu0  ;;  %v1042_v26 = vpop.f32.mrf.mxu1 }
 0x173   :  { %2443 = vst [vmem:[#allocation2 + $0x80] sm:$0xff] %v2351_v22   ;;  %v1344_v28 = vmax.f32 %v1216_v23, %v1280_v24  ;;  %v1478_v36 = vmax.f32 %v1414_v27, 0.0 }
 0x174   :  { %v691_v29 = vpop.f32.mrf.mxu0  ;;  %v1044_v30 = vpop.f32.mrf.mxu1 }
 0x175   :  { %v1415_v31 = vadd.f32 %v2909_v5, %v1344_v28  ;;  %v1217_v32 = vmax.f32 %v689_v25, %v691_v29  ;;  %v1281_v33 = vmax.f32 %v1042_v26, %v1044_v30 }
 0x176   :  { %v693_v34 = vpop.f32.mrf.mxu0  ;;  %v1046_v35 = vpop.f32.mrf.mxu1 }
 0x177   :  { %v1479_v37 = vmax.f32 %v1415_v31, 0.0  ;;  %v1345_v38 = vmax.f32 %v1217_v32, %v1281_v33 }
 0x178   :  { %v695_v39 = vpop.f32.mrf.mxu0  ;;  %v1048_v40 = vpop.f32.mrf.mxu1 }
 0x179   :  { %v2356_v41 = vpack.c.bf16 %v1479_v37, %v1478_v36  ;;  %v1218_v42 = vmax.f32 %v693_v34, %v695_v39  ;;  %v1282_v43 = vmax.f32 %v1046_v35, %v1048_v40  ;;  %v1416_v46 = vadd.f32 %v2909_v5, %v1345_v38 }
 0x17a   :  { %v699_v44 = vpop.f32.mrf.mxu0  ;;  %v1052_v45 = vpop.f32.mrf.mxu1 }
 0x17b   :  { %2444 = vst [vmem:[#allocation2 + $0x88] sm:$0xff] %v2356_v41   ;;  %v1346_v47 = vmax.f32 %v1218_v42, %v1282_v43  ;;  %v1480_v55 = vmax.f32 %v1416_v46, 0.0 }
 0x17c   :  { %v701_v48 = vpop.f32.mrf.mxu0  ;;  %v1054_v49 = vpop.f32.mrf.mxu1 }
 0x17d   :  { %v1417_v50 = vadd.f32 %v2909_v5, %v1346_v47  ;;  %v1219_v51 = vmax.f32 %v699_v44, %v701_v48  ;;  %v1283_v52 = vmax.f32 %v1052_v45, %v1054_v49 }
 0x17e   :  { %v703_v53 = vpop.f32.mrf.mxu0  ;;  %v1056_v54 = vpop.f32.mrf.mxu1 }
 0x17f   :  { %v1481_v56 = vmax.f32 %v1417_v50, 0.0  ;;  %v1347_v57 = vmax.f32 %v1219_v51, %v1283_v52 }
 0x180   :  { %v705_v58 = vpop.f32.mrf.mxu0  ;;  %v1058_v59 = vpop.f32.mrf.mxu1 }
 0x181   :  { %v2361_v60 = vpack.c.bf16 %v1481_v56, %v1480_v55  ;;  %v1220_v61 = vmax.f32 %v703_v53, %v705_v58  ;;  %v1284_v62 = vmax.f32 %v1056_v54, %v1058_v59  ;;  %v1418_v2 = vadd.f32 %v2909_v5, %v1347_v57 }
 0x182   :  { %v709_v63 = vpop.f32.mrf.mxu0  ;;  %v1062_v0 = vpop.f32.mrf.mxu1 }
 0x183   :  { %2445 = vst [vmem:[#allocation2 + $0x90] sm:$0xff] %v2361_v60   ;;  %v1348_v3 = vmax.f32 %v1220_v61, %v1284_v62  ;;  %v1482_v11 = vmax.f32 %v1418_v2, 0.0 }
 0x184   :  { %v711_v1 = vpop.f32.mrf.mxu0  ;;  %v1064_v4 = vpop.f32.mrf.mxu1 }
 0x185   :  { %v1419_v6 = vadd.f32 %v2909_v5, %v1348_v3  ;;  %v1221_v7 = vmax.f32 %v709_v63, %v711_v1  ;;  %v1285_v8 = vmax.f32 %v1062_v0, %v1064_v4 }
 0x186   :  { %v713_v9 = vpop.f32.mrf.mxu0  ;;  %v1066_v10 = vpop.f32.mrf.mxu1 }
 0x187   :  { %v1483_v12 = vmax.f32 %v1419_v6, 0.0  ;;  %v1349_v13 = vmax.f32 %v1221_v7, %v1285_v8 }
 0x188   :  { %v715_v14 = vpop.f32.mrf.mxu0  ;;  %v1068_v15 = vpop.f32.mrf.mxu1 }
 0x189   :  { %v2366_v16 = vpack.c.bf16 %v1483_v12, %v1482_v11  ;;  %v1222_v17 = vmax.f32 %v713_v9, %v715_v14  ;;  %v1286_v18 = vmax.f32 %v1066_v10, %v1068_v15  ;;  %v1420_v21 = vadd.f32 %v2909_v5, %v1349_v13 }
 0x18a   :  { %v719_v19 = vpop.f32.mrf.mxu0  ;;  %v1072_v20 = vpop.f32.mrf.mxu1 }
 0x18b   :  { %2446 = vst [vmem:[#allocation2 + $0x98] sm:$0xff] %v2366_v16   ;;  %v1350_v22 = vmax.f32 %v1222_v17, %v1286_v18  ;;  %v1484_v30 = vmax.f32 %v1420_v21, 0.0 }
 0x18c   :  { %v721_v23 = vpop.f32.mrf.mxu0  ;;  %v1074_v24 = vpop.f32.mrf.mxu1 }
 0x18d   :  { %v1421_v25 = vadd.f32 %v2909_v5, %v1350_v22  ;;  %v1223_v26 = vmax.f32 %v719_v19, %v721_v23  ;;  %v1287_v27 = vmax.f32 %v1072_v20, %v1074_v24 }
 0x18e   :  { %v723_v28 = vpop.f32.mrf.mxu0  ;;  %v1076_v29 = vpop.f32.mrf.mxu1 }
 0x18f   :  { %v1485_v31 = vmax.f32 %v1421_v25, 0.0  ;;  %v1351_v32 = vmax.f32 %v1223_v26, %v1287_v27 }
 0x190   :  { %v725_v33 = vpop.f32.mrf.mxu0  ;;  %v1078_v34 = vpop.f32.mrf.mxu1 }
 0x191   :  { %v2371_v35 = vpack.c.bf16 %v1485_v31, %v1484_v30  ;;  %v1224_v36 = vmax.f32 %v723_v28, %v725_v33  ;;  %v1288_v37 = vmax.f32 %v1076_v29, %v1078_v34  ;;  %v1422_v40 = vadd.f32 %v2909_v5, %v1351_v32  ;;  %v2992_v34 = vld [vmem:[%s3051_s2] ss:$0 sm:$0xff]  ;;  %s3010_s2 = smov 0  }
 0x192   :  { %v729_v38 = vpop.f32.mrf.mxu0  ;;  %v1082_v39 = vpop.f32.mrf.mxu1 }
 0x193   :  { %2447 = vst [vmem:[#allocation2 + $0xa0] sm:$0xff] %v2371_v35   ;;  %v1352_v41 = vmax.f32 %v1224_v36, %v1288_v37  ;;  %v1486_v49 = vmax.f32 %v1422_v40, 0.0 }
 0x194   :  { %v731_v42 = vpop.f32.mrf.mxu0  ;;  %v1084_v43 = vpop.f32.mrf.mxu1 }
 0x195   :  { %v1423_v44 = vadd.f32 %v2909_v5, %v1352_v41  ;;  %v1225_v45 = vmax.f32 %v729_v38, %v731_v42  ;;  %v1289_v46 = vmax.f32 %v1082_v39, %v1084_v43 }
 0x196   :  { %v733_v47 = vpop.f32.mrf.mxu0  ;;  %v1086_v48 = vpop.f32.mrf.mxu1 }
 0x197   :  { %v1487_v50 = vmax.f32 %v1423_v44, 0.0  ;;  %v1353_v51 = vmax.f32 %v1225_v45, %v1289_v46 }
 0x198   :  { %v735_v52 = vpop.f32.mrf.mxu0  ;;  %v1088_v53 = vpop.f32.mrf.mxu1 }
 0x199   :  { %v2376_v54 = vpack.c.bf16 %v1487_v50, %v1486_v49  ;;  %v1226_v55 = vmax.f32 %v733_v47, %v735_v52  ;;  %v1290_v56 = vmax.f32 %v1086_v48, %v1088_v53  ;;  %v1424_v59 = vadd.f32 %v2909_v5, %v1353_v51 }
 0x19a   :  { %v739_v57 = vpop.f32.mrf.mxu0  ;;  %v1092_v58 = vpop.f32.mrf.mxu1 }
 0x19b   :  { %2448 = vst [vmem:[#allocation2 + $0xa8] sm:$0xff] %v2376_v54   ;;  %v1354_v60 = vmax.f32 %v1226_v55, %v1290_v56  ;;  %v1488_v4 = vmax.f32 %v1424_v59, 0.0 }
 0x19c   :  { %v741_v61 = vpop.f32.mrf.mxu0  ;;  %v1094_v62 = vpop.f32.mrf.mxu1 }
 0x19d   :  { %v1425_v63 = vadd.f32 %v2909_v5, %v1354_v60  ;;  %v1227_v0 = vmax.f32 %v739_v57, %v741_v61  ;;  %v1291_v2 = vmax.f32 %v1092_v58, %v1094_v62 }
 0x19e   :  { %v743_v3 = vpop.f32.mrf.mxu0  ;;  %v1096_v1 = vpop.f32.mrf.mxu1 }
 0x19f   :  { %v1489_v6 = vmax.f32 %v1425_v63, 0.0  ;;  %v1355_v7 = vmax.f32 %v1227_v0, %v1291_v2 }
 0x1a0   :  { %v745_v8 = vpop.f32.mrf.mxu0  ;;  %v1098_v9 = vpop.f32.mrf.mxu1 }
 0x1a1   :  { %v2381_v10 = vpack.c.bf16 %v1489_v6, %v1488_v4  ;;  %v1228_v11 = vmax.f32 %v743_v3, %v745_v8  ;;  %v1292_v12 = vmax.f32 %v1096_v1, %v1098_v9  ;;  %v1426_v15 = vadd.f32 %v2909_v5, %v1355_v7 }
 0x1a2   :  { %v749_v13 = vpop.f32.mrf.mxu0  ;;  %v1102_v14 = vpop.f32.mrf.mxu1 }
 0x1a3   :  { %2449 = vst [vmem:[#allocation2 + $0xb0] sm:$0xff] %v2381_v10   ;;  %v1356_v16 = vmax.f32 %v1228_v11, %v1292_v12  ;;  %v1490_v24 = vmax.f32 %v1426_v15, 0.0 }
 0x1a4   :  { %v751_v17 = vpop.f32.mrf.mxu0  ;;  %v1104_v18 = vpop.f32.mrf.mxu1 }
 0x1a5   :  { %v1427_v19 = vadd.f32 %v2909_v5, %v1356_v16  ;;  %v1229_v20 = vmax.f32 %v749_v13, %v751_v17  ;;  %v1293_v21 = vmax.f32 %v1102_v14, %v1104_v18 }
 0x1a6   :  { %v753_v22 = vpop.f32.mrf.mxu0  ;;  %v1106_v23 = vpop.f32.mrf.mxu1 }
 0x1a7   :  { %v1491_v25 = vmax.f32 %v1427_v19, 0.0  ;;  %v1357_v26 = vmax.f32 %v1229_v20, %v1293_v21 }
 0x1a8   :  { %v755_v27 = vpop.f32.mrf.mxu0  ;;  %v1108_v28 = vpop.f32.mrf.mxu1 }
 0x1a9   :  { %v2386_v29 = vpack.c.bf16 %v1491_v25, %v1490_v24  ;;  %v1230_v30 = vmax.f32 %v753_v22, %v755_v27  ;;  %v1294_v31 = vmax.f32 %v1106_v23, %v1108_v28  ;;  %v1428_v5 = vadd.f32 %v2992_v34, %v1357_v26 }
 0x1aa   :  { %v759_v32 = vpop.f32.mrf.mxu0  ;;  %v1112_v33 = vpop.f32.mrf.mxu1 }
 0x1ab   :  { %2450 = vst [vmem:[#allocation2 + $0xb8] sm:$0xff] %v2386_v29   ;;  %v1358_v35 = vmax.f32 %v1230_v30, %v1294_v31  ;;  %v1492_v43 = vmax.f32 %v1428_v5, 0.0 }
 0x1ac   :  { %v761_v36 = vpop.f32.mrf.mxu0  ;;  %v1114_v37 = vpop.f32.mrf.mxu1 }
 0x1ad   :  { %v1429_v38 = vadd.f32 %v2992_v34, %v1358_v35  ;;  %v1231_v39 = vmax.f32 %v759_v32, %v761_v36  ;;  %v1295_v40 = vmax.f32 %v1112_v33, %v1114_v37 }
 0x1ae   :  { %v763_v41 = vpop.f32.mrf.mxu0  ;;  %v1116_v42 = vpop.f32.mrf.mxu1 }
 0x1af   :  { %v1493_v44 = vmax.f32 %v1429_v38, 0.0  ;;  %v1359_v45 = vmax.f32 %v1231_v39, %v1295_v40 }
 0x1b0   :  { %v765_v46 = vpop.f32.mrf.mxu0  ;;  %v1118_v47 = vpop.f32.mrf.mxu1 }
 0x1b1   :  { %v2391_v48 = vpack.c.bf16 %v1493_v44, %v1492_v43  ;;  %v1232_v49 = vmax.f32 %v763_v41, %v765_v46  ;;  %v1296_v50 = vmax.f32 %v1116_v42, %v1118_v47  ;;  %v1430_v53 = vadd.f32 %v2992_v34, %v1359_v45 }
 0x1b2   :  { %v769_v51 = vpop.f32.mrf.mxu0  ;;  %v1122_v52 = vpop.f32.mrf.mxu1 }
 0x1b3   :  { %2451 = vst [vmem:[#allocation2 + $0xc0] sm:$0xff] %v2391_v48   ;;  %v1360_v54 = vmax.f32 %v1232_v49, %v1296_v50  ;;  %v1494_v62 = vmax.f32 %v1430_v53, 0.0 }
 0x1b4   :  { %v771_v55 = vpop.f32.mrf.mxu0  ;;  %v1124_v56 = vpop.f32.mrf.mxu1 }
 0x1b5   :  { %v1431_v57 = vadd.f32 %v2992_v34, %v1360_v54  ;;  %v1233_v58 = vmax.f32 %v769_v51, %v771_v55  ;;  %v1297_v59 = vmax.f32 %v1122_v52, %v1124_v56 }
 0x1b6   :  { %v773_v60 = vpop.f32.mrf.mxu0  ;;  %v1126_v61 = vpop.f32.mrf.mxu1 }
 0x1b7   :  { %v1495_v63 = vmax.f32 %v1431_v57, 0.0  ;;  %v1361_v0 = vmax.f32 %v1233_v58, %v1297_v59 }
 0x1b8   :  { %v775_v2 = vpop.f32.mrf.mxu0  ;;  %v1128_v3 = vpop.f32.mrf.mxu1 }
 0x1b9   :  { %v2396_v1 = vpack.c.bf16 %v1495_v63, %v1494_v62  ;;  %v1234_v4 = vmax.f32 %v773_v60, %v775_v2  ;;  %v1298_v6 = vmax.f32 %v1126_v61, %v1128_v3  ;;  %v1432_v9 = vadd.f32 %v2992_v34, %v1361_v0 }
 0x1ba   :  { %v779_v7 = vpop.f32.mrf.mxu0  ;;  %v1132_v8 = vpop.f32.mrf.mxu1 }
 0x1bb   :  { %2452 = vst [vmem:[#allocation2 + $0xc8] sm:$0xff] %v2396_v1   ;;  %v1362_v10 = vmax.f32 %v1234_v4, %v1298_v6  ;;  %v1496_v18 = vmax.f32 %v1432_v9, 0.0 }
 0x1bc   :  { %v781_v11 = vpop.f32.mrf.mxu0  ;;  %v1134_v12 = vpop.f32.mrf.mxu1 }
 0x1bd   :  { %v1433_v13 = vadd.f32 %v2992_v34, %v1362_v10  ;;  %v1235_v14 = vmax.f32 %v779_v7, %v781_v11  ;;  %v1299_v15 = vmax.f32 %v1132_v8, %v1134_v12 }
 0x1be   :  { %v783_v16 = vpop.f32.mrf.mxu0  ;;  %v1136_v17 = vpop.f32.mrf.mxu1 }
 0x1bf   :  { %v1497_v19 = vmax.f32 %v1433_v13, 0.0  ;;  %v1363_v20 = vmax.f32 %v1235_v14, %v1299_v15 }
 0x1c0   :  { %v785_v21 = vpop.f32.mrf.mxu0  ;;  %v1138_v22 = vpop.f32.mrf.mxu1 }
 0x1c1   :  { %v2401_v23 = vpack.c.bf16 %v1497_v19, %v1496_v18  ;;  %v1236_v24 = vmax.f32 %v783_v16, %v785_v21  ;;  %v1300_v25 = vmax.f32 %v1136_v17, %v1138_v22  ;;  %v1434_v28 = vadd.f32 %v2992_v34, %v1363_v20 }
 0x1c2   :  { %v789_v26 = vpop.f32.mrf.mxu0  ;;  %v1142_v27 = vpop.f32.mrf.mxu1 }
 0x1c3   :  { %2453 = vst [vmem:[#allocation2 + $0xd0] sm:$0xff] %v2401_v23   ;;  %v1364_v29 = vmax.f32 %v1236_v24, %v1300_v25  ;;  %v1498_v37 = vmax.f32 %v1434_v28, 0.0 }
 0x1c4   :  { %v791_v30 = vpop.f32.mrf.mxu0  ;;  %v1144_v31 = vpop.f32.mrf.mxu1 }
 0x1c5   :  { %v1435_v32 = vadd.f32 %v2992_v34, %v1364_v29  ;;  %v1237_v33 = vmax.f32 %v789_v26, %v791_v30  ;;  %v1301_v5 = vmax.f32 %v1142_v27, %v1144_v31 }
 0x1c6   :  { %v793_v35 = vpop.f32.mrf.mxu0  ;;  %v1146_v36 = vpop.f32.mrf.mxu1 }
 0x1c7   :  { %v1499_v38 = vmax.f32 %v1435_v32, 0.0  ;;  %v1365_v39 = vmax.f32 %v1237_v33, %v1301_v5 }
 0x1c8   :  { %v795_v40 = vpop.f32.mrf.mxu0  ;;  %v1148_v41 = vpop.f32.mrf.mxu1 }
 0x1c9   :  { %v2406_v42 = vpack.c.bf16 %v1499_v38, %v1498_v37  ;;  %v1238_v43 = vmax.f32 %v793_v35, %v795_v40  ;;  %v1302_v44 = vmax.f32 %v1146_v36, %v1148_v41  ;;  %v1436_v47 = vadd.f32 %v2992_v34, %v1365_v39 }
 0x1ca   :  { %v799_v45 = vpop.f32.mrf.mxu0  ;;  %v1152_v46 = vpop.f32.mrf.mxu1 }
 0x1cb   :  { %2454 = vst [vmem:[#allocation2 + $0xd8] sm:$0xff] %v2406_v42   ;;  %v1366_v48 = vmax.f32 %v1238_v43, %v1302_v44  ;;  %v1500_v56 = vmax.f32 %v1436_v47, 0.0 }
 0x1cc   :  { %v801_v49 = vpop.f32.mrf.mxu0  ;;  %v1154_v50 = vpop.f32.mrf.mxu1 }
 0x1cd   :  { %v1437_v51 = vadd.f32 %v2992_v34, %v1366_v48  ;;  %v1239_v52 = vmax.f32 %v799_v45, %v801_v49  ;;  %v1303_v53 = vmax.f32 %v1152_v46, %v1154_v50  ;;  %v2627_v45 = vmov 0.0  }
 0x1ce   :  { %v803_v54 = vpop.f32.mrf.mxu0  ;;  %v1156_v55 = vpop.f32.mrf.mxu1 }
 0x1cf   :  { %v1501_v57 = vmax.f32 %v1437_v51, 0.0  ;;  %v1367_v58 = vmax.f32 %v1239_v52, %v1303_v53 }
 0x1d0   :  { %v805_v59 = vpop.f32.mrf.mxu0  ;;  %v1158_v60 = vpop.f32.mrf.mxu1 }
 0x1d1   :  { %v2411_v61 = vpack.c.bf16 %v1501_v57, %v1500_v56  ;;  %v1240_v62 = vmax.f32 %v803_v54, %v805_v59  ;;  %v1304_v63 = vmax.f32 %v1156_v55, %v1158_v60  ;;  %v1438_v3 = vadd.f32 %v2992_v34, %v1367_v58 }
 0x1d2   :  { %v809_v0 = vpop.f32.mrf.mxu0  ;;  %v1162_v2 = vpop.f32.mrf.mxu1 }
 0x1d3   :  { %2455 = vst [vmem:[#allocation2 + $0xe0] sm:$0xff] %v2411_v61   ;;  %v1368_v1 = vmax.f32 %v1240_v62, %v1304_v63  ;;  %v1502_v12 = vmax.f32 %v1438_v3, 0.0 }
 0x1d4   :  { %v811_v4 = vpop.f32.mrf.mxu0  ;;  %v1164_v6 = vpop.f32.mrf.mxu1 }
 0x1d5   :  { %v1439_v7 = vadd.f32 %v2992_v34, %v1368_v1  ;;  %v1241_v8 = vmax.f32 %v809_v0, %v811_v4  ;;  %v1305_v9 = vmax.f32 %v1162_v2, %v1164_v6 }
 0x1d6   :  { %v813_v10 = vpop.f32.mrf.mxu0  ;;  %v1166_v11 = vpop.f32.mrf.mxu1 }
 0x1d7   :  { %v1503_v13 = vmax.f32 %v1439_v7, 0.0  ;;  %v1369_v14 = vmax.f32 %v1241_v8, %v1305_v9 }
 0x1d8   :  { %v815_v15 = vpop.f32.mrf.mxu0  ;;  %v1168_v16 = vpop.f32.mrf.mxu1 }
 0x1d9   :  { %v2416_v17 = vpack.c.bf16 %v1503_v13, %v1502_v12  ;;  %v1242_v18 = vmax.f32 %v813_v10, %v815_v15  ;;  %v1306_v19 = vmax.f32 %v1166_v11, %v1168_v16  ;;  %v1440_v22 = vadd.f32 %v2992_v34, %v1369_v14 }
 0x1da   :  { %v819_v20 = vpop.f32.mrf.mxu0  ;;  %v1172_v21 = vpop.f32.mrf.mxu1 }
 0x1db   :  { %2456 = vst [vmem:[#allocation2 + $0xe8] sm:$0xff] %v2416_v17   ;;  %v1370_v23 = vmax.f32 %v1242_v18, %v1306_v19  ;;  %v1504_v31 = vmax.f32 %v1440_v22, 0.0 }
 0x1dc   :  { %v821_v24 = vpop.f32.mrf.mxu0  ;;  %v1174_v25 = vpop.f32.mrf.mxu1 }
 0x1dd   :  { %v1441_v26 = vadd.f32 %v2992_v34, %v1370_v23  ;;  %v1243_v27 = vmax.f32 %v819_v20, %v821_v24  ;;  %v1307_v28 = vmax.f32 %v1172_v21, %v1174_v25 }
 0x1de   :  { %v823_v29 = vpop.f32.mrf.mxu0  ;;  %v1176_v30 = vpop.f32.mrf.mxu1 }
 0x1df   :  { %v1505_v32 = vmax.f32 %v1441_v26, 0.0  ;;  %v1371_v33 = vmax.f32 %v1243_v27, %v1307_v28 }
 0x1e0   :  { %v825_v5 = vpop.f32.mrf.mxu0  ;;  %v1178_v35 = vpop.f32.mrf.mxu1 }
 0x1e1   :  { %v2421_v36 = vpack.c.bf16 %v1505_v32, %v1504_v31  ;;  %v1244_v37 = vmax.f32 %v823_v29, %v825_v5  ;;  %v1308_v38 = vmax.f32 %v1176_v30, %v1178_v35  ;;  %v1442_v39 = vadd.f32 %v2992_v34, %v1371_v33 }
 0x1e3   :  { %2457 = vst [vmem:[#allocation2 + $0xf0] sm:$0xff] %v2421_v36   ;;  %v1372_v40 = vmax.f32 %v1244_v37, %v1308_v38  ;;  %v1506_v42 = vmax.f32 %v1442_v39, 0.0 }
 0x1e5   :  { %v1443_v41 = vadd.f32 %v2992_v34, %v1372_v40 }
 0x1e7   :  { %v1507_v43 = vmax.f32 %v1443_v41, 0.0 }
 0x1e9   :  { %v2426_v44 = vpack.c.bf16 %v1507_v43, %v1506_v42 }
 0x1eb   :  { %2458 = vst [vmem:[#allocation2 + $0xf8] sm:$0xff] %v2426_v44  }
 0x1ec LB: > { %v2636_v46 = vmov 0.0   ;;  %vm2637_vm0 = vmmov 0   ;;  %s2267_s14 = sshll.u32 %s2633_s2, 6  ;;  %s2185_s18 = sshll.u32 %s2633_s2, 2  ;;  %s2633_s2 = sphi %s3010_s2, %s1833_s2   ;;  %v2629_v45 = vphi %v2627_v45, %v2628_v45  }
 0x1ed   : > { %2473 = vmatprep.subr.bf16.mxu0 %v2636_v46  ;;  %2489 = vmatprep.mubr.msk.bf16.mxu0 %vm2637_vm0, %v2636_v46  ;;  %s1840_s17 = scalar_lea.vmem %s3045_s3, %s2267_s14  ;;  %s1836_s19 = scalar_lea.vmem [#allocation2], %s2185_s18 }
 0x1ee   : > { %v2607_v34 = vld [vmem:[%s1840_s17 + $0x38] sm:$0xff]   ;;  %v2608_v47 = vld [vmem:[%s1840_s17 + $0x30] sm:$0xff]   ;;  %v2609_v48 = vld [vmem:[%s1840_s17 + $0x28] sm:$0xff]   ;;  %s1833_s2 = sadd.s32 1, %s2633_s2  }
 0x1ef   : > { %2474 = vmatpush3.bf16.msra.mxu0 %v2607_v34  ;;  %v2610_v49 = vld [vmem:[%s1840_s17 + $0x20] sm:$0xff]   ;;  %v2611_v50 = vld [vmem:[%s1840_s17 + $0x18] sm:$0xff]   ;;  %v2612_v51 = vld [vmem:[%s1840_s17 + $0x10] sm:$0xff]   ;;  %p1830_p0 = scmp.ge.s32.totalorder %s1833_s2, 64  }
 0x1f0   : > { %2475 = vmatprep.subr.bf16.mxu0 %v2636_v46  ;;  %v2613_v52 = vld [vmem:[%s1840_s17 + $0x8] sm:$0xff]   ;;  %v2614_v53 = vld [vmem:[%s1840_s17] sm:$0xff]   ;;  %v2615_v60 = vld [vmem:[%s3047_s5 + $0x18] sm:$0xff] (%p1830_p0)   ;;  %v2638_v61 = vmov (%p1830_p0), 0.0   ;;  %vm2639_vm1 = vmmov (%p1830_p0), 0   ;;  %vm1995_vm2 = vcmask (%p1830_p0), 523264  }
 0x1f1   :  { %v2616_v62 = vld [vmem:[%s3047_s5 + $0x10] sm:$0xff] (%p1830_p0)   ;;  %v2196_v63 = vld [vmem:[%s3046_s4] ss:$0 sm:$0xff] (%p1830_p0)  ;;  %v2617_v2 = vld [vmem:[%s3047_s5 + $0x8] sm:$0xff] (%p1830_p0)  }
 0x1f2   : > { %v1837_v54 = vld [vmem:[%s1836_s19] sm:$0xf] }
 0x1f3   : > { %2476 = vmatpush3.bf16.msra.mxu0 %v2608_v47  ;;  %v2618_v1 = vld [vmem:[%s3047_s5] sm:$0xff] (%p1830_p0)  }
 0x1f4   : > { %2477 = vmatprep.subr.bf16.mxu0 %v2636_v46  ;;  %v2197_v6 = vld [vmem:[%s3048_s6] ss:$0 sm:$0xff] (%p1830_p0) }
 0x1f7   : > { %2478 = vmatpush3.bf16.msra.mxu0 %v2609_v48 }
 0x1f8   : > { %2479 = vmatprep.subr.bf16.mxu0 %v2636_v46 }
 0x1fb   : > { %2480 = vmatpush3.bf16.msra.mxu0 %v2610_v49 }
 0x1fc   : > { %2481 = vmatprep.subr.bf16.mxu0 %v2636_v46 }
 0x1ff   : > { %2482 = vmatpush3.bf16.msra.mxu0 %v2611_v50 }
 0x200   : > { %2483 = vmatprep.subr.bf16.mxu0 %v2636_v46 }
 0x203   : > { %2484 = vmatpush3.bf16.msra.mxu0 %v2612_v51 }
 0x204   : > { %2485 = vmatprep.subr.bf16.mxu0 %v2636_v46 }
 0x207   : > { %2486 = vmatpush3.bf16.msra.mxu0 %v2613_v52 }
 0x208   : > { %2487 = vmatprep.subr.bf16.mxu0 %v2636_v46 }
 0x20b   : > { %2488 = vmatpush3.bf16.msra.mxu0 %v2614_v53 }
 0x20c   :  { %2493 = vmatprep.subr.bf16.mxu0 (%p1830_p0), %v2638_v61 }
 0x20e   : > { %2490 = vmatmul.mubr.bf16.vlgmr.msra.gmra.mxu0 %v1837_v54 }
 0x20f   :  { %2494 = vmatpush3.bf16.msra.mxu0 (%p1830_p0), %v2615_v60  ;;  %2501 = vmatprep.mubr.msk.bf16.mxu0 (%p1830_p0), %vm2639_vm1, %v2638_v61 }
 0x210   :  { %2495 = vmatprep.subr.bf16.mxu0 (%p1830_p0), %v2638_v61 }
 0x213   :  { %2496 = vmatpush3.bf16.msra.mxu0 (%p1830_p0), %v2616_v62 }
 0x214   :  { %2497 = vmatprep.subr.bf16.mxu0 (%p1830_p0), %v2638_v61 }
 0x217   :  { %2498 = vmatpush3.bf16.msra.mxu0 (%p1830_p0), %v2617_v2 }
 0x218   :  { %2499 = vmatprep.subr.bf16.mxu0 (%p1830_p0), %v2638_v61 }
 0x21b   :  { %2500 = vmatpush3.bf16.msra.mxu0 (%p1830_p0), %v2618_v1 }
 0x2ce   : > { %v1939_v55 = vpop.f32.mrf.mxu0 }
 0x2cf   : > { %v1945_v56 = vadd.f32 %v2629_v45, %v1939_v55  }
 0x2d0   : > { %v2491_v57 = vpop.f32.mrf.mxu0  ;;  %1832 = sbr.rel (!%p1830_p0) target bundleno = 492 (0x1ec), region = 57 }
 0x2d1   : > { %v2628_v45 = vmov %v1945_v56   ;;  %v1953_v0 = vadd.f32 (%p1830_p0), %v2196_v63, %v1945_v56 }
 0x2d2   : > { %v1942_v58 = vpop.f32.mrf.mxu0 }
 0x2d3   :  { %v1954_v3 = vmax.f32 (%p1830_p0), %v1953_v0, 0.0 }
 0x2d4   : > { %v2492_v59 = vpop.f32.mrf.mxu0 }
 0x2d5   :  { %v1955_v4 = vpack.c.bf16 %v1954_v3, %v1954_v3 }
 0x2d7   :  { %2502 = vmatmul.mubr.msk.bf16.vlgmr.msra.gmra.mxu0 %vm1995_vm2, %v1955_v4 }
 0x397   :  { %v2033_v7 = vpop.f32.mrf.mxu0 }
 0x398   :  { %v2034_v8 = vadd.f32 %v2197_v6, %v2033_v7 }
 0x399   :  { %v2503_v9 = vpop.f32.mrf.mxu0 }
 0x39a   :  { %2039 = vst [vmem:[%s3049_s7] sm:$0xff] %v2034_v8 }
 0x39b   :  { %v2036_v10 = vpop.f32.mrf.mxu0 }
 0x39d   :  { %v2504_v11 = vpop.f32.mrf.mxu0 }

</bundles_post_ra>
